<compile_context>
chip_gen: v6e
topology: v6e:2x2x1
jax: 0.10.0
libtpu: 0.0.40
codegen_flags: <defaults>
</compile_context>

<pallas_src>
import functools

import jax
import jax.numpy as jnp
from jax.experimental import pallas as pl
from jax.experimental.pallas import tpu as pltpu


def _round_up(x, m):
    return ((int(x) + m - 1) // m) * m


def _vmem_budget_bytes():
    """Generation-aware VMEM working-set budget (leaves headroom under physical)."""
    try:
        cap = pltpu.get_tpu_info().vmem_capacity_bytes
    except Exception:  # be conservative if the query is unavailable
        cap = 64 * 1024 * 1024
    if cap >= 100 * 1024 * 1024:        # v5e / v6e: 128 MiB physical VMEM
        return 96 * 1024 * 1024
    return 48 * 1024 * 1024              # v7x: 64 MiB physical VMEM


def _noisy_ce_kernel(n_rows, p_ref, logits_ref, targets_ref, partial_ref):
    i = pl.program_id(0)
    p_noisy = p_ref[0]                                    # f32 scalar from SMEM

    raw = logits_ref[...]                                 # (tile_n, C) native dtype
    tgt = targets_ref[...]                                 # (tile_n, 1) int32
    tn, c = raw.shape

    # Target logit selected in the NATIVE dtype (half-width vregs for bf16),
    # folded into one expression so no extra full-width temporaries stay live.
    # Exactly one non-zero per row -> the narrow-dtype sum is exact.
    col_ids = jax.lax.broadcasted_iota(jnp.int32, (tn, c), 1)
    tgt_logit = jnp.sum(
        jnp.where(col_ids == tgt, raw, jnp.zeros((), raw.dtype)),
        axis=1, keepdims=True,
    ).astype(jnp.float32)                                  # (tile_n, 1)

    # Row-wise numerically-stable logsumexp in f32; `shifted` feeds exp only.
    logits_f32 = raw.astype(jnp.float32)
    row_max = jnp.max(logits_f32, axis=1, keepdims=True)   # (tile_n, 1)
    log_denom = jnp.log(jnp.sum(jnp.exp(logits_f32 - row_max),
                                axis=1, keepdims=True))     # (tile_n, 1)

    tgt_shifted = tgt_logit - row_max                       # = logit[t] - row_max
    losses = log_denom - tgt_shifted                        # = logsumexp - logit[t]
    p_true = jnp.exp(tgt_shifted - log_denom)               # softmax prob of true class
    weights = (1.0 - p_noisy) + p_noisy * (1.0 - p_true)

    # Mask grid-edge padding rows with a SELECT (NaN-safe) so they don't corrupt
    # the mean.
    row_ids = i * tn + jax.lax.broadcasted_iota(jnp.int32, (tn, 1), 0)
    contrib = jnp.where(row_ids < n_rows, losses * weights, 0.0)

    # Lane-dense per-step partial sum (final mean is done in the wrapper).
    partial_ref[...] = jnp.broadcast_to(jnp.sum(contrib), partial_ref.shape)


def noisy_cross_entropy_loss(logits, targets, p_noisy, *, tile_n=None):
    """logits: (N, C) float (f32 or bf16); targets: (N,) int. Returns scalar f32."""
    n, c = logits.shape
    itemsize = jnp.dtype(logits.dtype).itemsize
    align = 16 if itemsize < 4 else 8           # bf16 packs 2 rows per sublane

    vmem_budget = _vmem_budget_bytes()
    auto = tile_n is None
    if auto:
        # Per-step working set ≈ 2x double-buffered logits tile (native dtype)
        # + ~4x (tile_n, C) f32 temporaries (cast, iota, exp, slop)
        # + 2x lane-padded (tile_n, 128) i32 targets tile.
        per_row_bytes = 2 * c * itemsize + 4 * c * 4 + 2 * 128 * 4
        tile_n = max(align, vmem_budget // per_row_bytes)
    tile_n = max(align, (int(tile_n) // align) * align)

    if auto and n >= 2 * align and tile_n * 2 > n:
        # Guarantee >= 2 grid steps so the "parallel" batch axis can actually
        # use both TensorCores on v7x (and never collapse to one giant block).
        tile_n = _round_up(pl.cdiv(n, 2), align)
    tile_n = min(tile_n, _round_up(n, align))    # never allocate past one padded block

    grid = pl.cdiv(n, tile_n)

    targets2d = targets.astype(jnp.int32).reshape(n, 1)
    p_arr = jnp.asarray(p_noisy, dtype=jnp.float32).reshape(1)

    cost = pl.CostEstimate(
        flops=5 * n * c,
        transcendentals=n * c,
        bytes_accessed=n * c * itemsize + n * 4 + grid * 128 * 4,
    )

    partial = pl.pallas_call(
        functools.partial(_noisy_ce_kernel, n),
        out_shape=jax.ShapeDtypeStruct((grid, 1, 128), jnp.float32),
        grid=(grid,),
        in_specs=[
            pl.BlockSpec(memory_space=pltpu.MemorySpace.SMEM),      # p_noisy scalar
            pl.BlockSpec((tile_n, c), lambda i: (i, 0)),            # logits tile
            pl.BlockSpec((tile_n, 1), lambda i: (i, 0)),            # targets tile
        ],
        out_specs=pl.BlockSpec((1, 1, 128), lambda i: (i, 0, 0)),   # per-step partial
        compiler_params=pltpu.CompilerParams(
            dimension_semantics=("parallel",),
            vmem_limit_bytes=vmem_budget,
        ),
        cost_estimate=cost,
    )(p_arr, logits, targets2d)

    return jnp.sum(partial[:, 0, 0]) / n


def _reference(logits, targets, p_noisy):
    logits = logits.astype(jnp.float32)
    lse = jax.scipy.special.logsumexp(logits, axis=1)
    tgt_logit = jnp.take_along_axis(logits, targets[:, None], axis=1)[:, 0]
    losses = lse - tgt_logit
    p_true = jnp.exp(tgt_logit - lse)
    weights = 1.0 - p_noisy + p_noisy * (1.0 - p_true)
    return jnp.mean(losses * weights)


if __name__ == "__main__":
    key = jax.random.PRNGKey(0)
    k1, k2 = jax.random.split(key)

    N, C = 300, 512           # N deliberately NOT a multiple of the tile size
    p_noisy = 0.2

    logits = jax.random.normal(k1, (N, C), dtype=jnp.float32)
    targets = jax.random.randint(k2, (N,), 0, C, dtype=jnp.int32)

    # 1) forced small tile -> multi-step grid + masked padded tail rows.
    loss = noisy_cross_entropy_loss(logits, targets, p_noisy, tile_n=128)
    loss = jax.block_until_ready(loss)
    ref = _reference(logits, targets, p_noisy)
    assert jnp.allclose(loss, ref, rtol=1e-4, atol=1e-5), (loss, ref)

    # 2) auto (generation-aware) tile + bf16 logits path (halved HBM traffic;
    #    target-logit select runs in bf16, the rest of the math in f32).
    logits_bf16 = logits.astype(jnp.bfloat16)
    loss_bf16 = jax.block_until_ready(
        noisy_cross_entropy_loss(logits_bf16, targets, p_noisy))
    ref_bf16 = _reference(logits_bf16.astype(jnp.float32), targets, p_noisy)
    assert jnp.allclose(loss_bf16, ref_bf16, rtol=1e-4, atol=1e-4), (loss_bf16, ref_bf16)

    # 3) auto f32 path (checks the >=2-grid-step split on the full-precision input).
    loss_auto = jax.block_until_ready(
        noisy_cross_entropy_loss(logits, targets, p_noisy))
    assert jnp.allclose(loss_auto, ref, rtol=1e-4, atol=1e-5), (loss_auto, ref)

    print("KERNEL_OK")
</pallas_src>

<mosaic_0001>
module attributes {stable_mosaic.version = 11 : i64} {
  func.func @_noisy_ce_kernel(%arg0: i32, %arg1: memref<1xf32, #tpu.memory_space<smem>>, %arg2: memref<128x512xf32, #tpu.memory_space<vmem>>, %arg3: memref<128x1xi32, #tpu.memory_space<vmem>>, %arg4: memref<1x1x128xf32, #tpu.memory_space<vmem>>) attributes {dimension_semantics = [#tpu.dimension_semantics<parallel>], iteration_bounds = array<i64: 3>, scalar_prefetch = 0 : i64, scratch_operands = 0 : i64, tpu.core_type = #tpu.core_type<tc>, window_params = [{transform_indices = @transform_0, window_bounds = array<i64: 1>}, {transform_indices = @transform_1, window_bounds = array<i64: 128, 512>}, {transform_indices = @transform_2, window_bounds = array<i64: 128, 1>}, {transform_indices = @transform_3, window_bounds = array<i64: 1, 1, 128>}]} {
    %c0 = arith.constant 0 : index
    %0 = memref.load %arg1[%c0] : memref<1xf32, #tpu.memory_space<smem>>
    %c0_0 = arith.constant 0 : index
    %c0_1 = arith.constant 0 : index
    %1 = vector.load %arg2[%c0_0, %c0_1] : memref<128x512xf32, #tpu.memory_space<vmem>>, vector<128x512xf32>
    %c0_2 = arith.constant 0 : index
    %c0_3 = arith.constant 0 : index
    %2 = vector.load %arg3[%c0_2, %c0_3] : memref<128x1xi32, #tpu.memory_space<vmem>>, vector<128x1xi32>
    %3 = tpu.iota {dimensions = array<i32: 1>} : vector<128x512xi32>
    %4 = vector.broadcast %2 : vector<128x1xi32> to vector<128x512xi32>
    %5 = arith.cmpi eq, %3, %4 : vector<128x512xi32>
    %cst = arith.constant 0.000000e+00 : f32
    %6 = vector.broadcast %cst : f32 to vector<128x512xf32>
    %7 = arith.select %5, %1, %6 : vector<128x512xi1>, vector<128x512xf32>
    %cst_4 = arith.constant dense<0.000000e+00> : vector<128xf32>
    %8 = vector.multi_reduction <add>, %7, %cst_4 [1] : vector<128x512xf32> to vector<128xf32>
    %9 = vector.shape_cast %8 : vector<128xf32> to vector<128x1xf32>
    %cst_5 = arith.constant dense<0xFF800000> : vector<128xf32>
    %10 = vector.multi_reduction <maximumf>, %1, %cst_5 [1] : vector<128x512xf32> to vector<128xf32>
    %11 = vector.shape_cast %10 : vector<128xf32> to vector<128x1xf32>
    %12 = vector.broadcast %11 : vector<128x1xf32> to vector<128x512xf32>
    %13 = arith.subf %1, %12 : vector<128x512xf32>
    %14 = math.exp %13 : vector<128x512xf32>
    %cst_6 = arith.constant dense<0.000000e+00> : vector<128xf32>
    %15 = vector.multi_reduction <add>, %14, %cst_6 [1] : vector<128x512xf32> to vector<128xf32>
    %16 = vector.shape_cast %15 : vector<128xf32> to vector<128x1xf32>
    %17 = math.log %16 : vector<128x1xf32>
    %18 = arith.subf %9, %11 : vector<128x1xf32>
    %19 = arith.subf %17, %18 : vector<128x1xf32>
    %20 = arith.subf %18, %17 : vector<128x1xf32>
    %21 = math.exp %20 : vector<128x1xf32>
    %cst_7 = arith.constant 1.000000e+00 : f32
    %22 = arith.subf %cst_7, %0 : f32
    %cst_8 = arith.constant 1.000000e+00 : f32
    %23 = vector.broadcast %cst_8 : f32 to vector<128x1xf32>
    %24 = arith.subf %23, %21 : vector<128x1xf32>
    %25 = vector.broadcast %0 : f32 to vector<128x1xf32>
    %26 = arith.mulf %25, %24 : vector<128x1xf32>
    %27 = vector.broadcast %22 : f32 to vector<128x1xf32>
    %28 = arith.addf %27, %26 : vector<128x1xf32>
    %c128_i32 = arith.constant 128 : i32
    %29 = arith.muli %arg0, %c128_i32 : i32
    %30 = tpu.iota {dimensions = array<i32: 0>} : vector<128x1xi32>
    %31 = vector.broadcast %29 : i32 to vector<128x1xi32>
    %32 = arith.addi %31, %30 : vector<128x1xi32>
    %c300_i32 = arith.constant 300 : i32
    %33 = vector.broadcast %c300_i32 : i32 to vector<128x1xi32>
    %34 = arith.cmpi slt, %32, %33 : vector<128x1xi32>
    %35 = arith.mulf %19, %28 : vector<128x1xf32>
    %cst_9 = arith.constant 0.000000e+00 : f32
    %36 = vector.broadcast %cst_9 : f32 to vector<128x1xf32>
    %37 = arith.select %34, %35, %36 : vector<128x1xi1>, vector<128x1xf32>
    %38 = vector.shape_cast %37 : vector<128x1xf32> to vector<1x128x1xf32>
    %cst_10 = arith.constant dense<0.000000e+00> : vector<1xf32>
    %39 = vector.multi_reduction <add>, %38, %cst_10 [1, 2] : vector<1x128x1xf32> to vector<1xf32>
    %40 = vector.shape_cast %39 : vector<1xf32> to vector<1x1x1xf32>
    %41 = vector.extract %40[0, 0, 0] : f32 from vector<1x1x1xf32>
    %42 = vector.broadcast %41 : f32 to vector<1x1x128xf32>
    %c0_11 = arith.constant 0 : index
    %c0_12 = arith.constant 0 : index
    %c0_13 = arith.constant 0 : index
    %43 = vector.load %arg4[%c0_11, %c0_12, %c0_13] : memref<1x1x128xf32, #tpu.memory_space<vmem>>, vector<1x1x128xf32>
    tpu.vector_store %arg4[%c0_11, %c0_12, %c0_13], %42 {strides = array<i32>} : memref<1x1x128xf32, #tpu.memory_space<vmem>>, vector<1x1x128xf32>,
    return
  }
  func.func @transform_0(%arg0: i32) -> i32 {
    %c0_i32 = arith.constant 0 : i32
    %c0_i32_0 = arith.constant 0 : i32
    return %c0_i32 : i32
  }
  func.func @transform_1(%arg0: i32) -> (i32, i32) {
    %c0_i32 = arith.constant 0 : i32
    %c0_i32_0 = arith.constant 0 : i32
    return %arg0, %c0_i32 : i32, i32
  }
  func.func @transform_2(%arg0: i32) -> (i32, i32) {
    %c0_i32 = arith.constant 0 : i32
    %c0_i32_0 = arith.constant 0 : i32
    return %arg0, %c0_i32 : i32, i32
  }
  func.func @transform_3(%arg0: i32) -> (i32, i32, i32) {
    %c0_i32 = arith.constant 0 : i32
    %c0_i32_0 = arith.constant 0 : i32
    %c0_i32_1 = arith.constant 0 : i32
    return %arg0, %c0_i32, %c0_i32_0 : i32, i32, i32
  }
}

</mosaic_0001>

<bundles_post_ra>
// kernel: tpu_custom_call.1
= control target key start
LH: loop header
LB: loop body
LE: loop exit
PB: predicated region body
PF: predicated region fallthrough
CT: control target
= control target key end

     0   :  { %s3232_s0 = inlined_call_operand.<no memory space> [shape: f32[1], index: 0, kind: input, shape index: {}]   ;;  %s3233_s1 = inlined_call_operand.hbm [shape: f32[300,512], index: 1, kind: input, shape index: {}]   ;;  %s3234_s2 = inlined_call_operand.vmem [shape: s32[300,1], index: 2, kind: input, shape index: {}]   ;;  %s3235_s3 = inlined_call_operand.hbm [shape: f32[3,1,128], index: 3, kind: output, shape index: {}]  }
   0x1   :  { %8 = sst [smem:[#allocation2]] %s3232_s0 }
   0x2   :  { %9 = vsyncpa [#allocation4], 0 }
   0x3   :  { %11 = vsyncpa [#allocation4 + $0x1], 0 }
   0x4   :  { %12 = vsyncpa [#allocation5], 0 }
   0x5   :  { %14 = vsyncpa [#allocation5 + $0x1], 0  ;;  %s1743_s14 = smov 0   ;;  %s1745_s15 = smov 0  }
   0x6   :  { %s1747_s16 = smov 0   ;;  %s1749_s17 = smov 0  }
   0x7 LB: > { %s1764_s0 = sadd.s32 4294967295, %s1713_s17   ;;  %s1319_s18 = sadd.s32 4294967294, %s1713_s17   ;;  %s1713_s17 = sphi %s1749_s17, %s3398_s17   ;;  %s1709_s16 = sphi %s1747_s16, %s3397_s16   ;;  %s1705_s15 = sphi %s1745_s15, %s3396_s15   ;;  %s1701_s14 = sphi %s1743_s14, %s3395_s14  }
   0x8   : > { %s1768_s19 = sadd.s32 1, %s1713_s17   ;;  %s48_s20 = sadd.s32 1, %s1709_s16 }
   0x9   : > { %s45_s21 = ssub.s32 %s1713_s17, %s1768_s19  ;;  %p55_p0 = scmp.ne.s32.totalorder %s1709_s16, %s1705_s15 }
   0xa   : > { %p46_p1 = scmp.eq.s32.totalorder %s45_s21, 0  ;;  %p56_p2 = scmp.eq.s32.totalorder %s1713_s17, 0 }
   0xb   : > { %p61_p3 = scmp.ne.s32.totalorder %s1705_s15, %s1701_s14  ;;  %p62_p4 = scmp.eq.s32.totalorder %s1764_s0, 0 }
   0xc   : > { %s1780_s22 = scalar_select %p46_p1, %s1709_s16, %s48_s20  }
   0xd   : > { %p57_p5 = por %p56_p2, %p55_p0  ;;  %p1782_p6 = por %p62_p4, %p61_p3 }
   0xe   : > { %p111_p7 = scmp.eq.s32.totalorder %s1764_s0, 2  ;;  %p117_p8 = scmp.eq.s32.totalorder %s1319_s18, 2 }
   0xf   : > { %p1321_p11 = scmp.ge.s32.totalorder %s1713_s17, 3 }
  0x10   : > { %p1787_p9 = por %p111_p7, %p55_p0  ;;  %p1791_p10 = por %p117_p8, %p61_p3 }
  0x11   : > { %136 = sbr.rel (%p1321_p11) target bundleno = 54 (0x36), region = 20 }
  0x12   : > { %s3286_s25 = scalar_select %p1791_p10, 1, 0 }
  0x16   : > { %139 = sbr.rel (!%p57_p5) target bundleno = 54 (0x36), region = 24  ;;  %s140_s26 = sand.u32 (%p57_p5), 1, %s1709_s16  }
  0x17   : > { %s1323_s27 = sshll.u32 (%p57_p5), %s1713_s17, 4  ;;  %s1322_s28 = sshll.u32 (%p57_p5), %s140_s26, 9 }
  0x18   : > { %s146_s29 = ssub.s32 (%p57_p5), 38, %s1323_s27  ;;  %s1801_s5 = scalar_lea.sflag (%p57_p5), [#allocation4], %s140_s26 }
  0x19   : > { %p147_p12 = scmp.lt.s32.totalorder (%p57_p5), %s146_s29, 16  ;;  %s144_s6 = scalar_lea.vmem (%p57_p5), [#allocation3], %s1322_s28 }
  0x1b   : > { %s3400_s29 = smov (!%p147_p12, %s146_s29), 16 }
  0x1c   : > { %s1798_s30 = sshll.u32 %s3400_s29, 9 }
  0x1d   : > { %s152_s4 = ssub.s32 8192, %s1798_s30 }
  0x1e   : > { %153 = vsyncadd %s1801_s5, %s152_s4  ;;  %p1326_p13 = scmp.ne.s32.totalorder %s1798_s30, 0  ;;  %s1341_s7 = sshll.u32 %s1713_s17, 13 }
  0x1f   : > { %s1809_s10 = scalar_lea.hbm %s3233_s1, %s1341_s7  ;;  %s159_s11 = sshll.u32 %s144_s6, 4  ;;  %s1811_s11 = int_to_ptr.vmem [resolvable:$true] %s159_s11 }
  0x20   : > { %s1623_s12 = scalar_lea.hbm %s1809_s10, %s1798_s30  ;;  %s1627_s20 = scalar_lea.hbm %s3233_s1, 19456 }
  0x21   : > { %p1624_p0 = scmp.ne.s32.totalorder %s1809_s10, %s1623_s12  ;;  %p1628_p3 = scmp.lt.s32.totalorder %s1809_s10, %s3233_s1 }
  0x22   : > { %p1629_p4 = scmp.lt.s32.totalorder %s1627_s20, %s1623_s12 }
  0x23   : > { %p1625_p1 = pnand %p1624_p0, %p1326_p13 }
  0x24   : > { %p1630_p5 = por %p1629_p4, %p1628_p3 }
  0x25   : > { %p1626_p2 = pneg %p1625_p1 }
  0x27   : > { %p1631_p7 = pnand %p1630_p5, %p1626_p2 }
  0x29   : > { %1634 = shalt.err (!%p1631_p7)
}
  0x2a   : > { %s1635_s27 = scalar_lea.vmem %s1811_s11, %s1798_s30  ;;  %s1715_s28 = smov [#allocation3]  }
  0x2b   : > { %p1636_p8 = scmp.ne.s32.totalorder %s1811_s11, %s1635_s27  ;;  %s1639_s29 = sshll.u32 %s1715_s28, 4  ;;  %s1640_s29 = int_to_ptr.vmem [resolvable:$false] %s1639_s29 }
  0x2c   : > { %s1641_s4 = scalar_lea.vmem %s1640_s29, 16384  ;;  %p1642_p0 = scmp.lt.s32.totalorder %s1811_s11, %s1640_s29 }
  0x2d   : > { %p1637_p11 = pnand %p1636_p8, %p1326_p13  ;;  %p1643_p1 = scmp.lt.s32.totalorder %s1641_s4, %s1635_s27 }
  0x2f   : > { %p1638_p12 = pneg %p1637_p11  ;;  %p1644_p10 = por %p1643_p1, %p1642_p0 }
  0x31   : > { %p1645_p3 = pnand %p1644_p10, %p1638_p12 }
  0x33   : > { %1648 = shalt.err (!%p1645_p3)
}
  0x34   : > { %s1716_s6 = smov 512   ;;  %s1717_s7 = smov 32  }
  0x35   : > { %165 = dma.hbm_to_vmem [thread:$0]  (%p1326_p13), %s1809_s10, %s1798_s30, %s1811_s11, %s1801_s5, %s1716_s6, %s1716_s6, %s1717_s7  }
  0x36 PF: > { %p1331_p2 = scmp.ge.s32.totalorder %s1713_s17, 1  ;;  %p184_p4 = scmp.lt.s32.totalorder %s1713_s17, 4 }
  0x38   : > { %p185_p5 = pnand %p1331_p2, %p184_p4 }
  0x3a   : > { %188 = sbr.rel (%p185_p5) target bundleno = 723 (0x2d3), region = 32 }
  0x3f   : > { %s1840_s8 = sand.u32 1, %s1705_s15  }
  0x40   : > { %s1332_s9 = sshll.u32 %s1840_s8, 9  ;;  %s191_s12 = scalar_lea.sflag [#allocation4], %s1840_s8 }
  0x41   : > { %s1844_s13 = scalar_lea.vmem [#allocation3], %s1332_s9 }
  0x42   : > { %1692 = dma.done.wait (%p1782_p6), %s191_s12, 8192  }
  0x43   : > { %1694 = vsyncadd (%p1782_p6), %s191_s12, 4294959104  ;;  %v1718_v0 = vmov 0   ;;  %v1851_v1 = vld [vmem:[%s1844_s13 + $0x40] sm:$0xff]  ;;  %v1854_v2 = vld [vmem:[%s1844_s13 + $0x48] sm:$0xff]  ;;  %s2107_s23 = sshll.u32 %s1764_s0, 4  ;;  %s2935_s20 = sld [smem:[#allocation2]] }
  0x44   : > { %1388 = vset.pattern.permute.xlu1 %v1718_v0  ;;  %1387 = vset.pattern.permute.xlu0 %v1718_v0  ;;  %v1857_v3 = vld [vmem:[%s1844_s13 + $0x50] sm:$0xff]  ;;  %v597_v4 = vmax.f32 %v1851_v1, %v1854_v2  ;;  %v1862_v5 = vld [vmem:[%s1844_s13] sm:$0xff]  ;;  %v1865_v6 = vld [vmem:[%s1844_s13 + $0x8] sm:$0xff]  ;;  %p236_p6 = scmp.lt.s32.totalorder %s2107_s23, 37  ;;  %s1335_s21 = sshll.u32 %s1764_s0, 7 }
  0x45   : > { %3287 = vst [vmem:[#allocation9_spill] sm:$0xff] %v1857_v3  ;;  %3288 = vst [vmem:[#allocation10_spill] sm:$0xff] %v1862_v5  ;;  %v1868_v7 = vld [vmem:[%s1844_s13 + $0x58] sm:$0xff]  ;;  %v1871_v8 = vld [vmem:[%s1844_s13 + $0x10] sm:$0xff]  ;;  %v587_v9 = vmax.f32 %v1862_v5, %v1865_v6  ;;  %s224_s0 = scalar_lea.vmem [#allocation6], %s1840_s8  ;;  %s1239_s6 = scalar_lea.hbm %s3235_s3, %s2107_s23 }
  0x46   : > { %3289 = vst [vmem:[#allocation11_spill] sm:$0xff] %v1865_v6  ;;  %3290 = vst [vmem:[#allocation12_spill] sm:$0xff] %v1868_v7  ;;  %v1876_v10 = vld [vmem:[%s1844_s13 + $0x60] sm:$0xff]  ;;  %v598_v11 = vmax.f32 %v597_v4, %v1857_v3  ;;  %v1880_v12 = vld [vmem:[%s1844_s13 + $0x18] sm:$0xff]  ;;  %s237_s30 = scalar_select %p236_p6, %s2107_s23, 37 }
  0x47   : > { %3291 = vst [vmem:[#allocation13_spill] sm:$0xff] %v1876_v10  ;;  %3292 = vst [vmem:[#allocation14_spill] sm:$0xff] %v1880_v12  ;;  %v1883_v13 = vld [vmem:[%s1844_s13 + $0x68] sm:$0xff]  ;;  %v1886_v14 = vld [vmem:[%s1844_s13 + $0x70] sm:$0xff]  ;;  %v588_v15 = vmax.f32 %v587_v9, %v1871_v8  ;;  %s1241_s27 = sshll.u32 %s224_s0, 4  ;;  %s1229_s7 = scalar_lea.sflag [#allocation5], %s1840_s8  ;;  %s3192_s27 = int_to_ptr.vmem [resolvable:$true] %s1241_s27 }
  0x48   : > { %3293 = vst [vmem:[#allocation15_spill] sm:$0xff] %v1883_v13  ;;  %3294 = vst [vmem:[#allocation16_spill] sm:$0xff] %v1886_v14  ;;  %v602_v16 = vmax.f32 %v1876_v10, %v1883_v13  ;;  %v1892_v17 = vld [vmem:[%s1844_s13 + $0x20] sm:$0xff]  ;;  %v1895_v18 = vld [vmem:[%s1844_s13 + $0x28] sm:$0xff]  ;;  %v599_v20 = vmax.f32 %v598_v11, %v1868_v7  ;;  %s1334_s5 = sshll.u32 %s237_s30, 3  ;;  %s1649_s9 = scalar_lea.vmem %s3192_s27, 16 }
  0x49   : > { %v1898_v19 = vld [vmem:[%s1844_s13 + $0x30] sm:$0xff]  ;;  %v1902_v21 = vld [vmem:[%s1844_s13 + $0x78] sm:$0xff]  ;;  %v592_v22 = vmax.f32 %v1892_v17, %v1895_v18  ;;  %v1907_v23 = vld [vmem:[%s1844_s13 + $0xa0] sm:$0xff]  ;;  %v589_v25 = vmax.f32 %v588_v15, %v1880_v12  ;;  %s2114_s18 = scalar_lea.vmem %s3234_s2, %s1334_s5  ;;  %s1051_s26 = ssub.f32 1.0, %s2935_s20 }
  0x4a   : > { %3295 = vst [vmem:[#allocation17_spill] sm:$0xff] %v1902_v21  ;;  %3296 = vst [vmem:[#allocation18_spill] sm:$0xff] %v1907_v23  ;;  %v1910_v24 = vld [vmem:[%s1844_s13 + $0xa8] sm:$0xff]  ;;  %v603_v26 = vmax.f32 %v602_v16, %v1886_v14  ;;  %v1915_v27 = vld [vmem:[%s1844_s13 + $0x38] sm:$0xff]  ;;  %600 = vmax.xlane.f32.xlu1 %v599_v20  ;;  %p1650_p10 = scmp.ne.s32.totalorder %s3192_s27, %s1649_s9  ;;  %s1719_s12 = smov [#allocation6]  }
  0x4b   : > { %3297 = vst [vmem:[#allocation19_spill] sm:$0xff] %v1910_v24  ;;  %v1918_v28 = vld [vmem:[%s1844_s13 + $0xb0] sm:$0xff]  ;;  %v612_v29 = vmax.f32 %v1907_v23, %v1910_v24  ;;  %v1923_v30 = vld [vmem:[%s1844_s13 + $0x80] sm:$0xff]  ;;  %v593_v31 = vmax.f32 %v592_v22, %v1898_v19  ;;  %v1927_v32 = vld [vmem:[%s1844_s13 + $0xb8] sm:$0xff]  ;;  %590 = vmax.xlane.f32.xlu0 %v589_v25 }
  0x4c   : > { %v1930_v33 = vld [vmem:[%s1844_s13 + $0x88] sm:$0xff]  ;;  %v1933_v34 = vld [vmem:[%s1844_s13 + $0x90] sm:$0xff]  ;;  %v604_v35 = vmax.f32 %v603_v26, %v1902_v21  ;;  %v1940_v38 = vld [vmem:[%s1844_s13 + $0xe0] sm:$0xff]  ;;  %p1651_p13 = pnand %p1650_p10, %p1787_p9 }
  0x4d   : > { %3298 = vst [vmem:[#allocation20_spill] sm:$0xff] %v1933_v34  ;;  %v613_v36 = vmax.f32 %v612_v29, %v1918_v28  ;;  %v607_v37 = vmax.f32 %v1923_v30, %v1930_v33  ;;  %v1943_v39 = vld [vmem:[%s1844_s13 + $0xe8] sm:$0xff]  ;;  %v1946_v40 = vld [vmem:[%s1844_s13 + $0xf0] sm:$0xff]  ;;  %v594_v41 = vmax.f32 %v593_v31, %v1915_v27  ;;  %v1950_v42 = vld [vmem:[%s1844_s13 + $0x98] sm:$0xff] }
  0x4e   : > { %3299 = vst [vmem:[#allocation21_spill] sm:$0xff] %v1950_v42  ;;  %v622_v43 = vmax.f32 %v1940_v38, %v1943_v39  ;;  %v1955_v44 = vld [vmem:[%s1844_s13 + $0xc0] sm:$0xff]  ;;  %v1958_v45 = vld [vmem:[%s1844_s13 + $0xc8] sm:$0xff]  ;;  %v1962_v47 = vld [vmem:[%s1844_s13 + $0xd0] sm:$0xff]  ;;  %605 = vmax.xlane.f32.xlu1 %v604_v35  ;;  %p1652_p7 = pneg %p1651_p13 }
  0x4f   : > { %v608_v46 = vmax.f32 %v607_v37, %v1933_v34  ;;  %v617_v48 = vmax.f32 %v1955_v44, %v1958_v45  ;;  %v1967_v49 = vld [vmem:[%s1844_s13 + $0x120] sm:$0xff]  ;;  %v614_v50 = vmax.f32 %v613_v36, %v1927_v32  ;;  %v1971_v51 = vld [vmem:[%s1844_s13 + $0xf8] sm:$0xff]  ;;  %v1978_v54 = vld [vmem:[%s1844_s13 + $0x128] sm:$0xff]  ;;  %595 = vmax.xlane.f32.xlu0 %v594_v41 }
  0x50   : > { %v623_v52 = vmax.f32 %v622_v43, %v1946_v40  ;;  %v1975_v53 = vld [vmem:[%s1844_s13 + $0xd8] sm:$0xff]  ;;  %v1983_v57 = vld [vmem:[%s1844_s13 + $0x130] sm:$0xff]  ;;  %v632_v58 = vmax.f32 %v1967_v49, %v1978_v54  ;;  %v1988_v59 = vld [vmem:[%s1844_s13 + $0x100] sm:$0xff] }
  0x51   : > { %v609_v55 = vmax.f32 %v608_v46, %v1950_v42  ;;  %v618_v56 = vmax.f32 %v617_v48, %v1962_v47  ;;  %v1991_v60 = vld [vmem:[%s1844_s13 + $0x108] sm:$0xff]  ;;  %v1994_v61 = vld [vmem:[%s1844_s13 + $0x110] sm:$0xff]  ;;  %v1999_v63 = vld [vmem:[%s1844_s13 + $0x160] sm:$0xff] }
  0x52   : > { %v627_v62 = vmax.f32 %v1988_v59, %v1991_v60  ;;  %v2002_v0 = vld [vmem:[%s1844_s13 + $0x168] sm:$0xff]  ;;  %v2005_v4 = vld [vmem:[%s1844_s13 + $0x140] sm:$0xff]  ;;  %615 = vmax.xlane.f32.xlu1 %v614_v50  ;;  %v624_v9 = vmax.f32 %v623_v52, %v1971_v51  ;;  %v2009_v11 = vld [vmem:[%s1844_s13 + $0x138] sm:$0xff]  ;;  %v633_v15 = vmax.f32 %v632_v58, %v1983_v57 }
  0x53   : > { %3300 = vst [vmem:[#allocation22_spill] sm:$0xff] %v2005_v4  ;;  %v2013_v16 = vld [vmem:[%s1844_s13 + $0x118] sm:$0xff]  ;;  %v642_v20 = vmax.f32 %v1999_v63, %v2002_v0  ;;  %v2018_v22 = vld [vmem:[%s1844_s13 + $0x148] sm:$0xff]  ;;  %610 = vmax.xlane.f32.xlu0 %v609_v55  ;;  %v619_v25 = vmax.f32 %v618_v56, %v1975_v53  ;;  %v2023_v29 = vld [vmem:[%s1844_s13 + $0x170] sm:$0xff] }
  0x54   : > { %3301 = vst [vmem:[#allocation23_spill] sm:$0xff] %v2018_v22  ;;  %v628_v26 = vmax.f32 %v627_v62, %v1994_v61  ;;  %v637_v31 = vmax.f32 %v2005_v4, %v2018_v22  ;;  %v2028_v35 = vld [vmem:[%s1844_s13 + $0x1a0] sm:$0xff]  ;;  %v2031_v36 = vld [vmem:[%s1844_s13 + $0x1a8] sm:$0xff]  ;;  %v2034_v37 = vld [vmem:[%s1844_s13 + $0x150] sm:$0xff]  ;;  %v634_v46 = vmax.f32 %v633_v15, %v2009_v11 }
  0x55   : > { %3302 = vst [vmem:[#allocation24_spill] sm:$0xff] %v2028_v35  ;;  %3303 = vst [vmem:[#allocation25_spill] sm:$0xff] %v2031_v36  ;;  %v2037_v41 = vld [vmem:[%s1844_s13 + $0x180] sm:$0xff]  ;;  %v2040_v43 = vld [vmem:[%s1844_s13 + $0x188] sm:$0xff]  ;;  %v643_v50 = vmax.f32 %v642_v20, %v2023_v29  ;;  %v652_v55 = vmax.f32 %v2028_v35, %v2031_v36 }
  0x56   : > { %3304 = vst [vmem:[#allocation26_spill] sm:$0xff] %v2034_v37  ;;  %3305 = vst [vmem:[#allocation27_spill] sm:$0xff] %v2037_v41  ;;  %625 = vmax.xlane.f32.xlu1 %v624_v9  ;;  %v2044_v48 = vld [vmem:[%s1844_s13 + $0x178] sm:$0xff]  ;;  %v629_v56 = vmax.f32 %v628_v26, %v2013_v16  ;;  %v638_v58 = vmax.f32 %v637_v31, %v2034_v37  ;;  %v2055_v62 = vld [vmem:[%s1844_s13 + $0x1b0] sm:$0xff]  ;;  %v647_v9 = vmax.f32 %v2037_v41, %v2040_v43 }
  0x57   : > { %3306 = vst [vmem:[#allocation28_spill] sm:$0xff] %v2040_v43  ;;  %v2048_v52 = vld [vmem:[%s1844_s13 + $0x158] sm:$0xff]  ;;  %620 = vmax.xlane.f32.xlu0 %v619_v25  ;;  %v2060_v15 = vld [vmem:[%s1844_s13 + $0x1e0] sm:$0xff]  ;;  %v2063_v20 = vld [vmem:[%s1844_s13 + $0x1e8] sm:$0xff]  ;;  %v644_v26 = vmax.f32 %v643_v50, %v2044_v48  ;;  %v653_v31 = vmax.f32 %v652_v55, %v2055_v62 }
  0x58   : > { %3307 = vst [vmem:[#allocation29_spill] sm:$0xff] %v2060_v15  ;;  %3308 = vst [vmem:[#allocation30_spill] sm:$0xff] %v2063_v20  ;;  %v2066_v22 = vld [vmem:[%s1844_s13 + $0x190] sm:$0xff]  ;;  %v2069_v25 = vld [vmem:[%s1844_s13 + $0x1c0] sm:$0xff]  ;;  %v662_v43 = vmax.f32 %v2060_v15, %v2063_v20  ;;  %v639_v41 = vmax.f32 %v638_v58, %v2048_v52 }
  0x59   : > { %3309 = vst [vmem:[#allocation31_spill] sm:$0xff] %v2066_v22  ;;  %3310 = vst [vmem:[#allocation32_spill] sm:$0xff] %v2069_v25  ;;  %v2072_v36 = vld [vmem:[%s1844_s13 + $0x1c8] sm:$0xff]  ;;  %v2080_v35 = vld [vmem:[%s1844_s13 + $0x1b8] sm:$0xff]  ;;  %v648_v37 = vmax.f32 %v647_v9, %v2066_v22 }
  0x5a   : > { %3311 = vst [vmem:[#allocation33_spill] sm:$0xff] %v2072_v36  ;;  %635 = vmax.xlane.f32.xlu1 %v634_v46  ;;  %v2084_v4 = vld [vmem:[%s1844_s13 + $0x1f0] sm:$0xff]  ;;  %v657_v46 = vmax.f32 %v2069_v25, %v2072_v36  ;;  %v2089_v50 = vld [vmem:[%s1844_s13 + $0x198] sm:$0xff]  ;;  %v654_v20 = vmax.f32 %v653_v31, %v2080_v35  ;;  %v315_v31 = vld [vmem:[%s2114_s18 + $0x28] sm:$0xff] }
  0x5b   : > { %630 = vmax.xlane.f32.xlu0 %v629_v56  ;;  %3312 = vst [vmem:[#allocation34_spill] sm:$0xff] %v2084_v4  ;;  %v2092_v55 = vld [vmem:[%s1844_s13 + $0x1d0] sm:$0xff]  ;;  %v663_v56 = vmax.f32 %v662_v43, %v2084_v4  ;;  %v649_v58 = vmax.f32 %v648_v37, %v2089_v50  ;;  %v2098_v15 = vld [vmem:[%s1844_s13 + $0x1f8] sm:$0xff]  ;;  %v311_v37 = vld [vmem:[%s2114_s18 + $0x8] sm:$0xff] }
  0x5c   : > { %3313 = vst [vmem:[#allocation35_spill] sm:$0xff] %v2092_v55  ;;  %3314 = vst [vmem:[#allocation36_spill] sm:$0xff] %v2098_v15  ;;  %v658_v9 = vmax.f32 %v657_v46, %v2092_v55  ;;  %v2102_v22 = vld [vmem:[%s1844_s13 + $0x1d8] sm:$0xff]  ;;  %v323_v46 = vld [vmem:[%s2114_s18 + $0x68] sm:$0xff]  ;;  %v3263_v55 = vlaneseq }
  0x5d   : > { %3315 = vst [vmem:[#allocation37_spill] sm:$0xff] %v2102_v22  ;;  %v664_v36 = vmax.f32 %v663_v56, %v2098_v15  ;;  %v313_v43 = vld [vmem:[%s2114_s18 + $0x18] sm:$0xff]  ;;  %v316_v56 = vld [vmem:[%s2114_s18 + $0x30] sm:$0xff] }
  0x5e   : > { %645 = vmax.xlane.f32.xlu1 %v644_v26  ;;  %v659_v25 = vmax.f32 %v658_v9, %v2102_v22  ;;  %v321_v26 = vld [vmem:[%s2114_s18 + $0x58] sm:$0xff] }
  0x5f   : > { %640 = vmax.xlane.f32.xlu0 %v639_v41  ;;  %v310_v41 = vld [vmem:[%s2114_s18] sm:$0xff]  ;;  %v317_v9 = vld [vmem:[%s2114_s18 + $0x38] sm:$0xff] }
  0x62   : > { %655 = vmax.xlane.f32.xlu1 %v654_v20  ;;  %v319_v20 = vld [vmem:[%s2114_s18 + $0x48] sm:$0xff] }
  0x63   : > { %650 = vmax.xlane.f32.xlu0 %v649_v58  ;;  %v325_v58 = vld [vmem:[%s2114_s18 + $0x78] sm:$0xff] }
  0x66   : > { %665 = vmax.xlane.f32.xlu1 %v664_v36  ;;  %v312_v36 = vld [vmem:[%s2114_s18 + $0x10] sm:$0xff] }
  0x67   : > { %660 = vmax.xlane.f32.xlu0 %v659_v25  ;;  %v314_v25 = vld [vmem:[%s2114_s18 + $0x20] sm:$0xff] }
  0x77   : > { %335 = vperm.xlu1 %1388, %v311_v37   ;;  %v318_v37 = vld [vmem:[%s2114_s18 + $0x40] sm:$0xff] }
  0x7b   : > { %338 = vperm.xlu1 %1388, %v312_v36   ;;  %v320_v36 = vld [vmem:[%s2114_s18 + $0x50] sm:$0xff] }
  0x7d   : > { %332 = vperm.xlu0 %1387, %v310_v41   ;;  %v322_v41 = vld [vmem:[%s2114_s18 + $0x60] sm:$0xff] }
  0x7f   : > { %341 = vperm.xlu1 %1388, %v313_v43   ;;  %v324_v43 = vld [vmem:[%s2114_s18 + $0x70] sm:$0xff] }
  0x81   : > { %359 = vperm.xlu0 %1387, %v319_v20  }
  0x83   : > { %344 = vperm.xlu1 %1388, %v314_v25  }
  0x85   : > { %365 = vperm.xlu0 %1387, %v321_v26  }
  0x87   : > { %347 = vperm.xlu1 %1388, %v315_v31  }
  0x89   : > { %371 = vperm.xlu0 %1387, %v323_v46  }
  0x8b   : > { %350 = vperm.xlu1 %1388, %v316_v56  }
  0x8d   : > { %377 = vperm.xlu0 %1387, %v325_v58  }
  0x8f   : > { %353 = vperm.xlu1 %1388, %v317_v9  }
  0x93   : > { %356 = vperm.xlu1 %1388, %v318_v37  }
  0x97   : > { %362 = vperm.xlu1 %1388, %v320_v36  }
  0x9b   : > { %368 = vperm.xlu1 %1388, %v322_v41  }
  0x9f   : > { %374 = vperm.xlu1 %1388, %v324_v43  }
  0xd3   : > { %v2132_v20 = vpop.xlane.xlu1 %600 }
  0xd4   : > { %3316 = vst [vmem:[#allocation38_spill] sm:$0xff] %v2132_v20  ;;  %v2134_v25 = vpop.xlane.xlu0 %590  ;;  %v675_v26 = vsub.f32 %v1851_v1, %v2132_v20  ;;  %v676_v31 = vsub.f32 %v1854_v2, %v2132_v20  ;;  %v677_v56 = vsub.f32 %v1857_v3, %v2132_v20  ;;  %v678_v58 = vsub.f32 %v1868_v7, %v2132_v20 }
  0xd5   : > { %3317 = vst [vmem:[#allocation39_spill] sm:$0xff] %v2134_v25  ;;  %v667_v37 = vsub.f32 %v1862_v5, %v2134_v25  ;;  %v668_v43 = vsub.f32 %v1865_v6, %v2134_v25  ;;  %v669_v4 = vsub.f32 %v1871_v8, %v2134_v25 }
  0xd6   : > { %v747_v9 = vmul.f32 1.442695, %v675_v26  ;;  %v749_v41 = vmul.f32 1.442695, %v676_v31  ;;  %v751_v15 = vmul.f32 1.442695, %v677_v56  ;;  %v670_v26 = vsub.f32 %v1880_v12, %v2134_v25 }
  0xd7   : > { %v2140_v46 = vpop.xlane.xlu1 %605  ;;  %v753_v3 = vmul.f32 1.442695, %v678_v58  ;;  %v731_v7 = vmul.f32 1.442695, %v667_v37  ;;  %v733_v31 = vmul.f32 1.442695, %v668_v43 }
  0xd8   : > { %3318 = vst [vmem:[#allocation40_spill] sm:$0xff] %v2140_v46  ;;  %v2148_v36 = vpop.xlane.xlu0 %595  ;;  %v679_v20 = vsub.f32 %v1876_v10, %v2140_v46  ;;  %1389 = vpow2.f32 %v747_v9  ;;  %v680_v6 = vsub.f32 %v1883_v13, %v2140_v46  ;;  %v2165_v56 = vand.u32 127, %v3263_v55 }
  0xd9   : > { %3319 = vst [vmem:[#allocation41_spill] sm:$0xff] %v2148_v36  ;;  %1391 = vpow2.f32 %v749_v41  ;;  %v735_v58 = vmul.f32 1.442695, %v669_v4  ;;  %v681_v25 = vsub.f32 %v1886_v14, %v2140_v46  ;;  %v737_v9 = vmul.f32 1.442695, %v670_v26 }
  0xda   : > { %1393 = vpow2.f32 %v751_v15  ;;  %v682_v37 = vsub.f32 %v1902_v21, %v2140_v46  ;;  %v755_v41 = vmul.f32 1.442695, %v679_v20  ;;  %v671_v43 = vsub.f32 %v1892_v17, %v2148_v36 }
  0xdb   : > { %v2152_v22 = vpop.xlane.xlu1 %615  ;;  %1395 = vpow2.f32 %v753_v3  ;;  %v672_v55 = vsub.f32 %v1895_v18, %v2148_v36  ;;  %v673_v4 = vsub.f32 %v1898_v19, %v2148_v36  ;;  %v757_v15 = vmul.f32 1.442695, %v680_v6 }
  0xdc   : > { %3320 = vst [vmem:[#allocation42_spill] sm:$0xff] %v2152_v22  ;;  %v2169_v12 = vpop.xlane.xlu0 %610  ;;  %1397 = vpow2.f32 %v731_v7  ;;  %v674_v3 = vsub.f32 %v1915_v27, %v2148_v36  ;;  %v2184_v46 = vadd.s32 128, %v2165_v56  ;;  %v759_v7 = vmul.f32 1.442695, %v681_v25 }
  0xdd   : > { %3322 = vst [vmem:[#allocation44_spill] sm:$0xff] %v2169_v12  ;;  %1399 = vpow2.f32 %v733_v31  ;;  %v687_v20 = vsub.f32 %v1907_v23, %v2152_v22  ;;  %v2189_v21 = vadd.s32 256, %v2165_v56  ;;  %v761_v14 = vmul.f32 1.442695, %v682_v37 }
  0xde   : > { %1401 = vpow2.f32 %v735_v58  ;;  %v688_v6 = vsub.f32 %v1910_v24, %v2152_v22  ;;  %v2194_v31 = vadd.s32 384, %v2165_v56  ;;  %v739_v36 = vmul.f32 1.442695, %v671_v43 }
  0xdf   : > { %v2162_v5 = vpop.xlane.xlu1 %625  ;;  %1403 = vpow2.f32 %v737_v9  ;;  %v741_v13 = vmul.f32 1.442695, %v672_v55  ;;  %v743_v10 = vmul.f32 1.442695, %v673_v4  ;;  %v745_v25 = vmul.f32 1.442695, %v674_v3 }
  0xe0   : > { %3321 = vst [vmem:[#allocation43_spill] sm:$0xff] %v2162_v5  ;;  %1405 = vpow2.f32 %v755_v41  ;;  %v2196_v58 = vpop.xlane.xlu0 %620  ;;  %v689_v23 = vsub.f32 %v1918_v28, %v2152_v22  ;;  %v690_v9 = vsub.f32 %v1927_v32, %v2152_v22  ;;  %v771_v24 = vmul.f32 1.442695, %v687_v20 }
  0xe1   : > { %3324 = vst [vmem:[#allocation46_spill] sm:$0xff] %v2196_v58  ;;  %1407 = vpow2.f32 %v757_v15  ;;  %v683_v41 = vsub.f32 %v1923_v30, %v2169_v12  ;;  %v684_v55 = vsub.f32 %v1930_v33, %v2169_v12  ;;  %v773_v43 = vmul.f32 1.442695, %v688_v6 }
  0xe2   : > { %1409 = vpow2.f32 %v759_v7  ;;  %v685_v4 = vsub.f32 %v1933_v34, %v2169_v12  ;;  %v686_v28 = vsub.f32 %v1950_v42, %v2169_v12  ;;  %v695_v32 = vsub.f32 %v1940_v38, %v2162_v5 }
  0xe3   : > { %v2181_v26 = vpop.xlane.xlu1 %635  ;;  %1411 = vpow2.f32 %v761_v14  ;;  %v696_v15 = vsub.f32 %v1943_v39, %v2162_v5  ;;  %v697_v3 = vsub.f32 %v1946_v40, %v2162_v5  ;;  %v775_v14 = vmul.f32 1.442695, %v689_v23 }
  0xe4   : > { %3323 = vst [vmem:[#allocation45_spill] sm:$0xff] %v2181_v26  ;;  %1413 = vpow2.f32 %v739_v36  ;;  %v777_v20 = vmul.f32 1.442695, %v690_v9  ;;  %v698_v6 = vsub.f32 %v1971_v51, %v2162_v5  ;;  %v763_v38 = vmul.f32 1.442695, %v683_v41  ;;  %v2228_v42 = vpop.xlane.xlu0 %630 }
  0xe5   : > { %v2218_v7 = vpop.eup %1389  ;;  %1415 = vpow2.f32 %v741_v13  ;;  %v765_v12 = vmul.f32 1.442695, %v684_v55  ;;  %v691_v39 = vsub.f32 %v1955_v44, %v2196_v58  ;;  %3327 = vst [vmem:[#allocation49_spill] sm:$0xff] %v2228_v42  ;;  %v767_v13 = vmul.f32 1.442695, %v685_v4 }
  0xe6   : > { %v2224_v36 = vpop.eup %1391  ;;  %1417 = vpow2.f32 %v743_v10  ;;  %v769_v23 = vmul.f32 1.442695, %v686_v28  ;;  %v692_v51 = vsub.f32 %v1958_v45, %v2196_v58  ;;  %v787_v5 = vmul.f32 1.442695, %v695_v32 }
  0xe7   : > { %v2202_v37 = vpop.xlane.xlu1 %645  ;;  %v2230_v40 = vpop.eup %1393  ;;  %1419 = vpow2.f32 %v745_v25  ;;  %v789_v10 = vmul.f32 1.442695, %v696_v15  ;;  %v791_v41 = vmul.f32 1.442695, %v697_v3  ;;  %v793_v44 = vmul.f32 1.442695, %v698_v6 }
  0xe8   : > { %3325 = vst [vmem:[#allocation47_spill] sm:$0xff] %v2202_v37  ;;  %v2234_v9 = vpop.eup %1395  ;;  %1421 = vpow2.f32 %v771_v24  ;;  %v693_v34 = vsub.f32 %v1962_v47, %v2196_v58  ;;  %v694_v25 = vsub.f32 %v1975_v53, %v2196_v58  ;;  %v779_v45 = vmul.f32 1.442695, %v691_v39 }
  0xe9   : > { %v2236_v55 = vpop.eup %1397  ;;  %1423 = vpow2.f32 %v773_v43  ;;  %v703_v24 = vsub.f32 %v1967_v49, %v2181_v26  ;;  %v704_v32 = vsub.f32 %v1978_v54, %v2181_v26  ;;  %v781_v15 = vmul.f32 1.442695, %v692_v51 }
  0xea   : > { %v2244_v28 = vpop.eup %1399  ;;  %1425 = vpow2.f32 %v775_v14  ;;  %v705_v47 = vsub.f32 %v1983_v57, %v2181_v26  ;;  %v706_v53 = vsub.f32 %v2009_v11, %v2181_v26  ;;  %v699_v14 = vsub.f32 %v1988_v59, %v2228_v42 }
  0xeb   : > { %v2222_v22 = vpop.xlane.xlu1 %655  ;;  %v2250_v43 = vpop.eup %1401  ;;  %1427 = vpow2.f32 %v777_v20  ;;  %v700_v49 = vsub.f32 %v1991_v60, %v2228_v42  ;;  %v701_v54 = vsub.f32 %v1994_v61, %v2228_v42  ;;  %v783_v57 = vmul.f32 1.442695, %v693_v34 }
  0xec   : > { %3326 = vst [vmem:[#allocation48_spill] sm:$0xff] %v2222_v22  ;;  %v2256_v3 = vpop.eup %1403  ;;  %1429 = vpow2.f32 %v763_v38  ;;  %v2264_v20 = vpop.xlane.xlu0 %640  ;;  %v785_v39 = vmul.f32 1.442695, %v694_v25  ;;  %v702_v11 = vsub.f32 %v2013_v16, %v2228_v42  ;;  %v803_v59 = vmul.f32 1.442695, %v703_v24 }
  0xed   : > { %3328 = vst [vmem:[#allocation50_spill] sm:$0xff] %v2256_v3  ;;  %3329 = vst [vmem:[#allocation51_spill] sm:$0xff] %v2264_v20  ;;  %v2266_v6 = vpop.eup %1405  ;;  %1431 = vpow2.f32 %v765_v12  ;;  %v805_v60 = vmul.f32 1.442695, %v704_v32  ;;  %v711_v61 = vsub.f32 %v1999_v63, %v2202_v37  ;;  %v807_v58 = vmul.f32 1.442695, %v705_v47 }
  0xee   : > { %v2272_v51 = vpop.eup %1407  ;;  %1433 = vpow2.f32 %v767_v13  ;;  %v809_v12 = vmul.f32 1.442695, %v706_v53  ;;  %v712_v34 = vsub.f32 %v2002_v0, %v2202_v37  ;;  %v795_v16 = vmul.f32 1.442695, %v699_v14  ;;  %v3333_v53 = vld [vmem:[#allocation22_spill] sm:$0xff] }
  0xef   : > { %v2242_v4 = vpop.xlane.xlu1 %665  ;;  %3330 = vst [vmem:[#allocation52_spill] sm:$0xff] %v2272_v51  ;;  %v2276_v26 = vpop.eup %1409  ;;  %1435 = vpow2.f32 %v769_v23  ;;  %v2282_v42 = vmul.f32 1.442695, %v700_v49  ;;  %v2284_v13 = vmul.f32 1.442695, %v701_v54  ;;  %v713_v23 = vsub.f32 %v2023_v29, %v2202_v37 }
  0xf0   : > { %3331 = vst [vmem:[#allocation53_spill] sm:$0xff] %v2276_v26  ;;  %v2280_v25 = vpop.eup %1411  ;;  %1437 = vpow2.f32 %v787_v5  ;;  %v2288_v63 = vmul.f32 1.442695, %v702_v11  ;;  %v714_v32 = vsub.f32 %v2044_v48, %v2202_v37  ;;  %v2298_v5 = vmul.f32 1.442695, %v711_v61  ;;  %v2304_v54 = vpop.xlane.xlu0 %650  ;;  %v3336_v48 = vld [vmem:[#allocation26_spill] sm:$0xff] }
  0xf1   : > { %3332 = vst [vmem:[#allocation54_spill] sm:$0xff] %v2280_v25  ;;  %v2286_v24 = vpop.eup %1413  ;;  %1439 = vpow2.f32 %v789_v10  ;;  %v707_v14 = vsub.f32 %v3333_v53, %v2264_v20  ;;  %v3334_v10 = vld [vmem:[#allocation23_spill] sm:$0xff]  ;;  %3335 = vst [vmem:[#allocation22_spill] sm:$0xff] %v2304_v54  ;;  %v2308_v29 = vmul.f32 1.442695, %v712_v34  ;;  %v709_v37 = vsub.f32 %v3336_v48, %v2264_v20  ;;  %v3337_v53 = vld [vmem:[#allocation24_spill] sm:$0xff] }
  0xf2   : > { %v2296_v47 = vpop.eup %1415  ;;  %1441 = vpow2.f32 %v791_v41  ;;  %v708_v49 = vsub.f32 %v3334_v10, %v2264_v20  ;;  %v710_v41 = vsub.f32 %v2048_v52, %v2264_v20  ;;  %v719_v25 = vsub.f32 %v3337_v53, %v2222_v22  ;;  %v3338_v10 = vld [vmem:[#allocation25_spill] sm:$0xff] }
  0xf3   : > { %v2270_v38 = vpop.permute.xlu1 %335  ;;  %v2306_v11 = vpop.eup %1417  ;;  %1443 = vpow2.f32 %v793_v44  ;;  %v720_v26 = vsub.f32 %v3338_v10, %v2222_v22  ;;  %v721_v44 = vsub.f32 %v2055_v62, %v2222_v22  ;;  %v2324_v3 = vmul.f32 1.442695, %v713_v23  ;;  %v3340_v10 = vld [vmem:[#allocation27_spill] sm:$0xff] }
  0xf4   : > { %v2314_v61 = vpop.eup %1419  ;;  %1445 = vpow2.f32 %v779_v45  ;;  %v2326_v48 = vmul.f32 1.442695, %v714_v32  ;;  %v722_v52 = vsub.f32 %v2080_v35, %v2222_v22  ;;  %v2332_v53 = vmul.f32 1.442695, %v707_v14  ;;  %v3342_v35 = vld [vmem:[#allocation28_spill] sm:$0xff] }
  0xf5   : > { %v2322_v34 = vpop.eup %1421  ;;  %1447 = vpow2.f32 %v781_v15  ;;  %v2334_v20 = vmul.f32 1.442695, %v708_v49  ;;  %v715_v62 = vsub.f32 %v3340_v10, %v2304_v54  ;;  %v2342_v23 = vmul.f32 1.442695, %v709_v37 }
  0xf6   : > { %v2330_v45 = vpop.eup %1423  ;;  %1449 = vpow2.f32 %v783_v57  ;;  %v2344_v32 = vmul.f32 1.442695, %v710_v41  ;;  %v716_v22 = vsub.f32 %v3342_v35, %v2304_v54  ;;  %v2350_v14 = vmul.f32 1.442695, %v719_v25 }
  0xf7   : > { %v2294_v0 = vpop.permute.xlu1 %338  ;;  %3339 = vst [vmem:[#allocation23_spill] sm:$0xff] %v2330_v45  ;;  %v2340_v15 = vpop.eup %1425  ;;  %1451 = vpow2.f32 %v785_v39  ;;  %v2352_v49 = vmul.f32 1.442695, %v720_v26  ;;  %v2354_v10 = vmul.f32 1.442695, %v721_v44  ;;  %vm383_vm0 = vcmp.eq.s32.totalorder %v2165_v56, %v2270_v38  ;;  %v3344_v26 = vld [vmem:[#allocation31_spill] sm:$0xff] }
  0xf8   : > { %3341 = vst [vmem:[#allocation26_spill] sm:$0xff] %v2340_v15  ;;  %v2348_v57 = vpop.eup %1427  ;;  %1453 = vpow2.f32 %v803_v59  ;;  %v2356_v45 = vpop.xlane.xlu0 %660  ;;  %v2360_v37 = vmul.f32 1.442695, %v722_v52  ;;  %vm384_vm1 = vcmp.eq.s32.totalorder %v2184_v46, %v2270_v38  ;;  %v717_v59 = vsub.f32 %v3344_v26, %v2304_v54 }
  0xf9   : > { %3343 = vst [vmem:[#allocation24_spill] sm:$0xff] %v2348_v57  ;;  %v2358_v15 = vpop.eup %1429  ;;  %1455 = vpow2.f32 %v805_v60  ;;  %v718_v25 = vsub.f32 %v2089_v50, %v2304_v54  ;;  %v2372_v41 = vmul.f32 1.442695, %v715_v62  ;;  %v2376_v44 = vmul.f32 1.442695, %v716_v22 }
  0xfa   : > { %v2366_v39 = vpop.eup %1431  ;;  %1457 = vpow2.f32 %v807_v58  ;;  %vm385_vm2 = vcmp.eq.s32.totalorder %v2189_v21, %v2270_v38  ;;  %vm386_vm3 = vcmp.eq.s32.totalorder %v2194_v31, %v2270_v38  ;;  %v447_v35 = vsel %vm383_vm0, %v1892_v17, 0.0  ;;  %v3347_v38 = vld [vmem:[#allocation9_spill] sm:$0xff] }
  0xfb   : > { %v2338_v51 = vpop.permute.xlu1 %341  ;;  %v2374_v60 = vpop.eup %1433  ;;  %1459 = vpow2.f32 %v809_v12  ;;  %v448_v50 = vsel %vm384_vm1, %v1895_v18, 0.0  ;;  %v449_v62 = vsel %vm385_vm2, %v1898_v19, 0.0  ;;  %vm387_vm4 = vcmp.eq.s32.totalorder %v2165_v56, %v2294_v0  ;;  %v3345_v18 = vld [vmem:[#allocation29_spill] sm:$0xff] }
  0xfc   : > { %v2382_v58 = vpop.eup %1435  ;;  %1461 = vpow2.f32 %v795_v16  ;;  %v333_v52 = vpop.permute.xlu0 %332  ;;  %vm388_vm5 = vcmp.eq.s32.totalorder %v2184_v46, %v2294_v0  ;;  %v512_v12 = vadd.f32 %v448_v50, %v447_v35  ;;  %v2399_v17 = vmul.f32 1.442695, %v717_v59 }
  0xfd   : > { %v2389_v22 = vpop.eup %1437  ;;  %1463 = vpow2.f32 %v2282_v42  ;;  %v450_v42 = vsel %vm386_vm3, %v1915_v27, 0.0  ;;  %vm379_vm6 = vcmp.eq.s32.totalorder %v2165_v56, %v333_v52  ;;  %vm389_vm7 = vcmp.eq.s32.totalorder %v2189_v21, %v2294_v0 }
  0xfe   : > { %v2396_v16 = vpop.eup %1439  ;;  %1465 = vpow2.f32 %v2284_v13  ;;  %v513_v35 = vadd.f32 %v512_v12, %v449_v62  ;;  %vm380_vm8 = vcmp.eq.s32.totalorder %v2184_v46, %v333_v52  ;;  %v451_v59 = vsel %vm387_vm4, %v1851_v1, 0.0  ;;  %v3348_v1 = vld [vmem:[#allocation10_spill] sm:$0xff] }
  0xff   : > { %v2387_v26 = vpop.permute.xlu1 %344  ;;  %v2407_v54 = vpop.eup %1441  ;;  %1467 = vpow2.f32 %v2288_v63  ;;  %v452_v50 = vsel %vm388_vm5, %v1854_v2, 0.0  ;;  %v453_v27 = vsel %vm389_vm7, %v3347_v38, 0.0  ;;  %vm390_vm9 = vcmp.eq.s32.totalorder %v2194_v31, %v2294_v0 }
 0x100   : > { %v2413_v13 = vpop.eup %1443  ;;  %1469 = vpow2.f32 %v2298_v5  ;;  %v514_v63 = vadd.f32 %v513_v35, %v450_v42  ;;  %v517_v62 = vadd.f32 %v452_v50, %v451_v59  ;;  %vm391_vm10 = vcmp.eq.s32.totalorder %v2165_v56, %v2338_v51  ;;  %v3349_v42 = vld [vmem:[#allocation11_spill] sm:$0xff]  ;;  %v3350_v50 = vld [vmem:[#allocation12_spill] sm:$0xff] }
 0x101   : > { %3346 = vst [vmem:[#allocation25_spill] sm:$0xff] %v2413_v13  ;;  %v2419_v19 = vpop.eup %1445  ;;  %1471 = vpow2.f32 %v2308_v29  ;;  %vm381_vm11 = vcmp.eq.s32.totalorder %v2189_v21, %v333_v52  ;;  %v443_v2 = vsel %vm379_vm6, %v3348_v1, 0.0  ;;  %vm392_vm12 = vcmp.eq.s32.totalorder %v2184_v46, %v2338_v51 }
 0x102   : > { %v2424_v12 = vpop.eup %1447  ;;  %1473 = vpow2.f32 %v2324_v3  ;;  %515 = vadd.xlane.f32.xlu1 %v514_v63  ;;  %v518_v29 = vadd.f32 %v517_v62, %v453_v27  ;;  %v444_v35 = vsel %vm380_vm8, %v3349_v42, 0.0  ;;  %v454_v1 = vsel %vm390_vm9, %v3350_v50, 0.0  ;;  %v3351_v27 = vld [vmem:[#allocation30_spill] sm:$0xff] }
 0x103   : > { %v2433_v38 = vpop.permute.xlu1 %347  ;;  %v2435_v5 = vpop.eup %1449  ;;  %1475 = vpow2.f32 %v2326_v48  ;;  %vm382_vm13 = vcmp.eq.s32.totalorder %v2194_v31, %v333_v52  ;;  %v507_v3 = vadd.f32 %v444_v35, %v443_v2  ;;  %v445_v48 = vsel %vm381_vm11, %v1871_v8, 0.0  ;;  %v3352_v2 = vld [vmem:[#allocation34_spill] sm:$0xff]  ;;  %v3354_v52 = vld [vmem:[#allocation13_spill] sm:$0xff] }
 0x104   : > { %v2443_v59 = vpop.eup %1451  ;;  %1477 = vpow2.f32 %v2332_v53  ;;  %v519_v62 = vadd.f32 %v518_v29, %v454_v1  ;;  %v2462_v0 = vmul.f32 1.442695, %v718_v25  ;;  %v3353_v53 = vld [vmem:[#allocation14_spill] sm:$0xff]  ;;  %vm393_vm14 = vcmp.eq.s32.totalorder %v2189_v21, %v2338_v51 }
 0x105   : > { %v2451_v13 = vpop.eup %1453  ;;  %1479 = vpow2.f32 %v2334_v20  ;;  %v508_v50 = vadd.f32 %v507_v3, %v445_v48  ;;  %v446_v63 = vsel %vm382_vm13, %v3353_v53, 0.0  ;;  %v455_v8 = vsel %vm391_vm10, %v3354_v52, 0.0  ;;  %v3355_v20 = vld [vmem:[#allocation15_spill] sm:$0xff]  ;;  %v3356_v52 = vld [vmem:[#allocation36_spill] sm:$0xff] }
 0x106   : > { %v2459_v42 = vpop.eup %1455  ;;  %520 = vadd.xlane.f32.xlu1 %v519_v62  ;;  %v456_v25 = vsel %vm392_vm12, %v3355_v20, 0.0  ;;  %1481 = vpow2.f32 %v2342_v23  ;;  %vm395_vm15 = vcmp.eq.s32.totalorder %v2165_v56, %v2387_v26  ;;  %vm396_vm0 = vcmp.eq.s32.totalorder %v2184_v46, %v2387_v26 }
 0x107   : > { %v2466_v57 = vpop.eup %1457  ;;  %v509_v1 = vadd.f32 %v508_v50, %v446_v63  ;;  %v2486_v3 = vpop.permute.xlu1 %350  ;;  %1483 = vpow2.f32 %v2344_v32  ;;  %vm394_vm1 = vcmp.eq.s32.totalorder %v2194_v31, %v2338_v51  ;;  %v522_v48 = vadd.f32 %v456_v25, %v455_v8  ;;  %v3358_v32 = vld [vmem:[#allocation16_spill] sm:$0xff] }
 0x108   : > { %v2479_v29 = vpop.eup %1459  ;;  %v864_v23 = vadd.f32 %v2296_v47, %v2286_v24  ;;  %1485 = vpow2.f32 %v2350_v14  ;;  %v3357_v50 = vsub.f32 %v3345_v18, %v2242_v4  ;;  %v457_v8 = vsel %vm393_vm14, %v3358_v32, 0.0  ;;  %v3359_v24 = vld [vmem:[#allocation32_spill] sm:$0xff]  ;;  %v3360_v18 = vld [vmem:[#allocation17_spill] sm:$0xff] }
 0x109   : > { %v2488_v62 = vpop.eup %1461  ;;  %510 = vadd.xlane.f32.xlu0 %v509_v1  ;;  %1487 = vpow2.f32 %v2352_v49  ;;  %v723_v47 = vsub.f32 %v3359_v24, %v2356_v45  ;;  %v523_v14 = vadd.f32 %v522_v48, %v457_v8  ;;  %vm397_vm2 = vcmp.eq.s32.totalorder %v2189_v21, %v2387_v26 }
 0x10a   : > { %v2495_v53 = vpop.eup %1463  ;;  %v2503_v20 = vmul.f32 1.442695, %v3357_v50  ;;  %v865_v63 = vadd.f32 %v2306_v11, %v864_v23  ;;  %v458_v50 = vsel %vm394_vm1, %v3360_v18, 0.0  ;;  %v459_v51 = vsel %vm395_vm15, %v1923_v30, 0.0  ;;  %v3361_v11 = vld [vmem:[#allocation33_spill] sm:$0xff] }
 0x10b   : > { %v2509_v25 = vpop.eup %1465  ;;  %v460_v49 = vsel %vm396_vm0, %v1930_v33, 0.0  ;;  %1489 = vpow2.f32 %v2354_v10  ;;  %v724_v1 = vsub.f32 %v3361_v11, %v2356_v45  ;;  %v524_v48 = vadd.f32 %v523_v14, %v458_v50  ;;  %v2539_v33 = vpop.permute.xlu1 %353 }
 0x10c   : > { %v2515_v35 = vpop.eup %1467  ;;  %v866_v23 = vadd.f32 %v2314_v61, %v865_v63  ;;  %1491 = vpow2.f32 %v2360_v37  ;;  %vm398_vm3 = vcmp.eq.s32.totalorder %v2194_v31, %v2387_v26  ;;  %v527_v30 = vadd.f32 %v460_v49, %v459_v51  ;;  %v3362_v61 = vld [vmem:[#allocation20_spill] sm:$0xff]  ;;  %v2559_v50 = vpop.permute.xlu0 %359  ;;  %v3363_v51 = vld [vmem:[#allocation21_spill] sm:$0xff] }
 0x10d   : > { %v2532_v32 = vpop.eup %1469  ;;  %v869_v8 = vadd.f32 %v2224_v36, %v2218_v7  ;;  %1493 = vpow2.f32 %v2372_v41  ;;  %v843_v24 = vmul.f32 1.442695, %v723_v47  ;;  %525 = vadd.xlane.f32.xlu1 %v524_v48  ;;  %v461_v37 = vsel %vm397_vm2, %v3362_v61, 0.0  ;;  %v3366_v48 = vld [vmem:[#allocation37_spill] sm:$0xff] }
 0x10e   : > { %v2541_v10 = vpop.eup %1471  ;;  %867 = vadd.xlane.f32.xlu0 %v866_v23  ;;  %v859_v63 = vadd.f32 %v2244_v28, %v2236_v55  ;;  %1495 = vpow2.f32 %v2376_v44  ;;  %v528_v7 = vadd.f32 %v527_v30, %v461_v37  ;;  %v879_v41 = vadd.f32 %v2366_v39, %v2358_v15  ;;  %v3364_v39 = vld [vmem:[#allocation52_spill] sm:$0xff]  ;;  %v3371_v37 = vld [vmem:[#allocation53_spill] sm:$0xff] }
 0x10f   : > { %v2550_v14 = vpop.eup %1473  ;;  %v870_v36 = vadd.f32 %v2230_v40, %v869_v8  ;;  %1497 = vpow2.f32 %v2399_v17  ;;  %v845_v18 = vmul.f32 1.442695, %v724_v1  ;;  %v462_v55 = vsel %vm398_vm3, %v3363_v51, 0.0  ;;  %v3365_v1 = vld [vmem:[#allocation35_spill] sm:$0xff] }
 0x110   : > { %v2556_v47 = vpop.eup %1475  ;;  %v860_v28 = vadd.f32 %v2250_v43, %v859_v63  ;;  %v529_v40 = vadd.f32 %v528_v7, %v462_v55  ;;  %v880_v15 = vadd.f32 %v2374_v60, %v879_v41  ;;  %v874_v17 = vadd.f32 %v3364_v39, %v2266_v6 }
 0x111   : > { %v2566_v44 = vpop.eup %1477  ;;  %v871_v49 = vadd.f32 %v2234_v9, %v870_v36  ;;  %1499 = vpow2.f32 %v2462_v0  ;;  %v725_v26 = vsub.f32 %v3365_v1, %v2356_v45  ;;  %v726_v43 = vsub.f32 %v3366_v48, %v2356_v45  ;;  %v2589_v0 = vpop.permute.xlu1 %356 }
 0x112   : > { %v2572_v11 = vpop.eup %1479  ;;  %v889_v23 = vadd.f32 %v2424_v12, %v2419_v19  ;;  %v3367_v9 = vsub.f32 %v3351_v27, %v2242_v4  ;;  %v3368_v6 = vsub.f32 %v3352_v2, %v2242_v4  ;;  %1501 = vpow2.f32 %v843_v24  ;;  %530 = vadd.xlane.f32.xlu1 %v529_v40  ;;  %v3369_v19 = vld [vmem:[#allocation50_spill] sm:$0xff]  ;;  %v3370_v27 = vld [vmem:[#allocation23_spill] sm:$0xff] }
 0x113   : > { %vm399_vm4 = vcmp.eq.s32.totalorder %v2165_v56, %v2433_v38  ;;  %872 = vadd.xlane.f32.xlu0 %v871_v49  ;;  %v2591_v8 = vpop.eup %1481  ;;  %1503 = vpow2.f32 %v845_v18  ;;  %vm400_vm5 = vcmp.eq.s32.totalorder %v2184_v46, %v2433_v38  ;;  %v861_v12 = vadd.f32 %v3369_v19, %v860_v28  ;;  %v2611_v28 = vpop.permute.xlu0 %365 }
 0x114   : > { %v853_v60 = vmul.f32 1.442695, %v3367_v9  ;;  %v855_v30 = vmul.f32 1.442695, %v3368_v6  ;;  %v884_v2 = vadd.f32 %v3370_v27, %v2322_v34  ;;  %v2598_v61 = vpop.eup %1483  ;;  %v881_v24 = vadd.f32 %v2382_v58, %v880_v15  ;;  %v3377_v9 = vld [vmem:[#allocation24_spill] sm:$0xff] }
 0x115   : > { %v875_v63 = vadd.f32 %v3371_v37, %v874_v17  ;;  %v890_v7 = vadd.f32 %v2435_v5, %v889_v23  ;;  %v899_v36 = vadd.f32 %v2495_v53, %v2488_v62  ;;  %v2605_v41 = vpop.eup %1485  ;;  %1505 = vpow2.f32 %v2503_v20  ;;  %v3373_v53 = vld [vmem:[#allocation18_spill] sm:$0xff]  ;;  %v3374_v20 = vld [vmem:[#allocation19_spill] sm:$0xff]  ;;  %v2638_v39 = vpop.permute.xlu1 %362  ;;  %v3378_v37 = vld [vmem:[#allocation25_spill] sm:$0xff] }
 0x116   : > { %v3372_v18 = vsub.f32 %v3356_v52, %v2242_v4  ;;  %v847_v34 = vmul.f32 1.442695, %v725_v26  ;;  %v849_v55 = vmul.f32 1.442695, %v726_v43  ;;  %v2613_v58 = vpop.eup %1487  ;;  %862 = vadd.xlane.f32.xlu1 %v861_v12  ;;  %v894_v5 = vadd.f32 %v2396_v16, %v2389_v22  ;;  %v3375_v22 = vld [vmem:[#allocation26_spill] sm:$0xff]  ;;  %v1582_v12 = vld [vmem:[%s1844_s13 + $0xc0] sm:$0xff] }
 0x117   : > { %882 = vadd.xlane.f32.xlu0 %v881_v24  ;;  %v904_v62 = vadd.f32 %v2459_v42, %v2451_v13  ;;  %v463_v52 = vsel %vm399_vm4, %v3373_v53, 0.0  ;;  %v464_v40 = vsel %vm400_vm5, %v3374_v20, 0.0  ;;  %1507 = vpow2.f32 %v853_v60  ;;  %v3376_v42 = vld [vmem:[#allocation54_spill] sm:$0xff]  ;;  %v2653_v23 = vpop.permute.xlu0 %371  ;;  %v1587_v20 = vld [vmem:[%s1844_s13 + $0xb8] sm:$0xff] }
 0x118   : > { %v857_v51 = vmul.f32 1.442695, %v3372_v18  ;;  %vm403_vm6 = vcmp.eq.s32.totalorder %v2165_v56, %v2486_v3  ;;  %vm404_vm7 = vcmp.eq.s32.totalorder %v2184_v46, %v2486_v3  ;;  %v885_v16 = vadd.f32 %v3375_v22, %v884_v2  ;;  %v2632_v13 = vpop.eup %1489 }
 0x119   : > { %1509 = vpow2.f32 %v855_v30  ;;  %vm415_vm8 = vcmp.eq.s32.totalorder %v2165_v56, %v2559_v50  ;;  %v876_v49 = vadd.f32 %v3376_v42, %v875_v63  ;;  %v891_v15 = vadd.f32 %v2443_v59, %v890_v7  ;;  %v2641_v1 = vpop.eup %1491  ;;  %v2687_v24 = vpop.permute.xlu1 %368  ;;  %v1589_v42 = vld [vmem:[%s1844_s13 + $0x108] sm:$0xff] }
 0x11a   : > { %v900_v17 = vadd.f32 %v2509_v25, %v899_v36  ;;  %1511 = vpow2.f32 %v857_v51  ;;  %vm416_vm9 = vcmp.eq.s32.totalorder %v2184_v46, %v2559_v50  ;;  %vm407_vm10 = vcmp.eq.s32.totalorder %v2165_v56, %v2539_v33  ;;  %v1494_v48 = vpop.eup %1493  ;;  %v1584_v36 = vld [vmem:[%s1844_s13 + $0xe0] sm:$0xff]  ;;  %v1585_v51 = vld [vmem:[%s1844_s13 + $0xe8] sm:$0xff] }
 0x11b   : > { %vm401_vm11 = vcmp.eq.s32.totalorder %v2189_v21, %v2433_v38  ;;  %v532_v26 = vadd.f32 %v464_v40, %v463_v52  ;;  %1513 = vpow2.f32 %v847_v34  ;;  %vm408_vm12 = vcmp.eq.s32.totalorder %v2184_v46, %v2539_v33  ;;  %877 = vadd.xlane.f32.xlu1 %v876_v49  ;;  %892 = vadd.xlane.f32.xlu0 %v891_v15  ;;  %v1496_v43 = vpop.eup %1495  ;;  %v1588_v40 = vld [vmem:[%s1844_s13 + $0xd0] sm:$0xff]  ;;  %v2724_v15 = vpop.permute.xlu0 %377 }
 0x11c   : > { %v895_v59 = vadd.f32 %v2407_v54, %v894_v5  ;;  %v905_v25 = vadd.f32 %v2466_v57, %v904_v62  ;;  %1515 = vpow2.f32 %v849_v55  ;;  %vm411_vm13 = vcmp.eq.s32.totalorder %v2165_v56, %v2589_v0  ;;  %v2660_v30 = vpop.eup %1497  ;;  %v1581_v57 = vld [vmem:[%s1844_s13 + $0xb0] sm:$0xff] }
 0x11d   : > { %v886_v60 = vadd.f32 %v3377_v9, %v885_v16  ;;  %v909_v6 = vadd.f32 %v2572_v11, %v2566_v44  ;;  %vm423_vm14 = vcmp.eq.s32.totalorder %v2165_v56, %v2611_v28  ;;  %vm424_vm15 = vcmp.eq.s32.totalorder %v2184_v46, %v2611_v28  ;;  %v1583_v11 = vld [vmem:[%s1844_s13 + $0xc8] sm:$0xff] }
 0x11e   : > { %v901_v54 = vadd.f32 %v2515_v35, %v900_v17  ;;  %v465_v19 = vsel %vm401_vm11, %v1581_v57, 0.0  ;;  %v467_v44 = vsel %vm403_vm6, %v1582_v12, 0.0  ;;  %v468_v27 = vsel %vm404_vm7, %v1583_v11, 0.0  ;;  %v2685_v2 = vpop.eup %1499 }
 0x11f   : > { %vm412_vm0 = vcmp.eq.s32.totalorder %v2184_v46, %v2589_v0  ;;  %vm402_vm1 = vcmp.eq.s32.totalorder %v2194_v31, %v2433_v38  ;;  %v533_v35 = vadd.f32 %v532_v26, %v465_v19  ;;  %vm405_vm2 = vcmp.eq.s32.totalorder %v2189_v21, %v2486_v3  ;;  %887 = vadd.xlane.f32.xlu1 %v886_v60  ;;  %v1502_v55 = vpop.eup %1501  ;;  %v1591_v60 = vld [vmem:[%s1844_s13 + $0x120] sm:$0xff]  ;;  %v1592_v19 = vld [vmem:[%s1844_s13 + $0xf0] sm:$0xff] }
 0x120   : > { %902 = vadd.xlane.f32.xlu0 %v901_v54  ;;  %v896_v63 = vadd.f32 %v3378_v37, %v895_v59  ;;  %v906_v7 = vadd.f32 %v2479_v29, %v905_v25  ;;  %v471_v18 = vsel %vm407_vm10, %v1584_v36, 0.0  ;;  %v472_v34 = vsel %vm408_vm12, %v1585_v51, 0.0  ;;  %v1586_v29 = vld [vmem:[%s1844_s13 + $0x100] sm:$0xff]  ;;  %v1504_v52 = vpop.eup %1503  ;;  %v2749_v54 = vpop.permute.xlu1 %374 }
 0x121   : > { %v910_v5 = vadd.f32 %v2591_v8, %v909_v6  ;;  %vm406_vm3 = vcmp.eq.s32.totalorder %v2194_v31, %v2486_v3  ;;  %v537_v62 = vadd.f32 %v468_v27, %v467_v44  ;;  %v475_v53 = vsel %vm411_vm13, %v1586_v29, 0.0  ;;  %v1594_v27 = vld [vmem:[%s1844_s13 + $0x110] sm:$0xff] }
 0x122   : > { %vm419_vm4 = vcmp.eq.s32.totalorder %v2165_v56, %v2638_v39  ;;  %vm420_vm5 = vcmp.eq.s32.totalorder %v2184_v46, %v2638_v39  ;;  %v466_v8 = vsel %vm402_vm1, %v1587_v20, 0.0  ;;  %v469_v22 = vsel %vm405_vm2, %v1588_v40, 0.0  ;;  %v1506_v59 = vpop.eup %1505 }
 0x123   : > { %v914_v16 = vadd.f32 %v2541_v10, %v2532_v32  ;;  %v476_v49 = vsel %vm412_vm0, %v1589_v42, 0.0  ;;  %v534_v17 = vadd.f32 %v533_v35, %v466_v8  ;;  %vm409_vm6 = vcmp.eq.s32.totalorder %v2189_v21, %v2539_v33  ;;  %897 = vadd.xlane.f32.xlu1 %v896_v63  ;;  %v1590_v32 = vld [vmem:[%s1844_s13 + $0xd8] sm:$0xff] }
 0x124   : > { %v542_v38 = vadd.f32 %v472_v34, %v471_v18  ;;  %v919_v26 = vadd.f32 %v1496_v43, %v1494_v48  ;;  %vm427_vm7 = vcmp.eq.s32.totalorder %v2165_v56, %v2687_v24  ;;  %vm428_vm10 = vcmp.eq.s32.totalorder %v2184_v46, %v2687_v24  ;;  %907 = vadd.xlane.f32.xlu0 %v906_v7  ;;  %v1508_v6 = vpop.eup %1507  ;;  %v1595_v63 = vld [vmem:[%s1844_s13 + $0xf8] sm:$0xff] }
 0x125   : > { %v470_v10 = vsel %vm406_vm3, %v1590_v32, 0.0  ;;  %vm410_vm11 = vcmp.eq.s32.totalorder %v2194_v31, %v2539_v33  ;;  %vm413_vm12 = vcmp.eq.s32.totalorder %v2189_v21, %v2589_v0  ;;  %v547_v48 = vadd.f32 %v476_v49, %v475_v53  ;;  %v1596_v33 = vld [vmem:[%s1844_s13 + $0x160] sm:$0xff]  ;;  %v1598_v8 = vld [vmem:[%s1844_s13 + $0x118] sm:$0xff] }
 0x126   : > { %v911_v25 = vadd.f32 %v2598_v61, %v910_v5  ;;  %v538_v43 = vadd.f32 %v537_v62, %v469_v22  ;;  %v924_v9 = vadd.f32 %v2613_v58, %v2605_v41  ;;  %v479_v3 = vsel %vm415_vm8, %v1591_v60, 0.0  ;;  %v1593_v58 = vld [vmem:[%s1844_s13 + $0x128] sm:$0xff]  ;;  %v1510_v44 = vpop.eup %1509  ;;  %v1599_v22 = vld [vmem:[%s1844_s13 + $0x130] sm:$0xff]  ;;  %v1600_v42 = vld [vmem:[%s1844_s13 + $0x138] sm:$0xff] }
 0x127   : > { %vm439_vm13 = vcmp.eq.s32.totalorder %v2165_v56, %v2724_v15  ;;  %v915_v57 = vadd.f32 %v2550_v14, %v914_v16  ;;  %v473_v61 = vsel %vm409_vm6, %v1592_v19, 0.0  ;;  %v929_v41 = vadd.f32 %v1504_v52, %v1502_v55  ;;  %v2773_v37 = vpop.eup %1511  ;;  %535 = vadd.xlane.f32.xlu1 %v534_v17  ;;  %v1597_v55 = vld [vmem:[%s1844_s13 + $0x168] sm:$0xff] }
 0x128   : > { %v480_v12 = vsel %vm416_vm9, %v1593_v58, 0.0  ;;  %vm431_vm8 = vcmp.eq.s32.totalorder %v2165_v56, %v2653_v23  ;;  %vm432_vm0 = vcmp.eq.s32.totalorder %v2184_v46, %v2653_v23  ;;  %vm440_vm1 = vcmp.eq.s32.totalorder %v2184_v46, %v2724_v15  ;;  %912 = vadd.xlane.f32.xlu0 %v911_v25  ;;  %v1514_v18 = vpop.eup %1513  ;;  %v1603_v25 = vld [vmem:[%s1844_s13 + $0x170] sm:$0xff]  ;;  %v1605_v60 = vld [vmem:[%s1844_s13 + $0x188] sm:$0xff] }
 0x129   : > { %v543_v14 = vadd.f32 %v542_v38, %v473_v61  ;;  %v920_v11 = vadd.f32 %v2660_v30, %v919_v26  ;;  %vm414_vm2 = vcmp.eq.s32.totalorder %v2194_v31, %v2589_v0  ;;  %v477_v35 = vsel %vm413_vm12, %v1594_v27, 0.0  ;;  %v1516_v62 = vpop.eup %1515  ;;  %v1609_v27 = vld [vmem:[%s1844_s13 + $0x190] sm:$0xff] }
 0x12a   : > { %v474_v7 = vsel %vm410_vm11, %v1595_v63, 0.0  ;;  %v548_v30 = vadd.f32 %v547_v48, %v477_v35  ;;  %vm417_vm9 = vcmp.eq.s32.totalorder %v2189_v21, %v2559_v50  ;;  %v552_v36 = vadd.f32 %v480_v12, %v479_v3  ;;  %v1607_v12 = vld [vmem:[%s1844_s13 + $0x1a0] sm:$0xff]  ;;  %v1610_v63 = vld [vmem:[%s1844_s13 + $0x1e8] sm:$0xff] }
 0x12b   : > { %vm435_vm3 = vcmp.eq.s32.totalorder %v2165_v56, %v2749_v54  ;;  %vm436_vm6 = vcmp.eq.s32.totalorder %v2184_v46, %v2749_v54  ;;  %v925_v51 = vadd.f32 %v2632_v13, %v924_v9  ;;  %vm418_vm12 = vcmp.eq.s32.totalorder %v2194_v31, %v2559_v50  ;;  %v1615_v56 = vld [vmem:[%s1844_s13 + $0x1f8] sm:$0xff] }
 0x12c   : > { %v487_v34 = vsel %vm423_vm14, %v1596_v33, 0.0  ;;  %v488_v5 = vsel %vm424_vm15, %v1597_v55, 0.0  ;;  %v539_v29 = vadd.f32 %v538_v43, %v470_v10  ;;  %v916_v53 = vadd.f32 %v2556_v47, %v915_v57  ;;  %v1602_v10 = vld [vmem:[%s1844_s13 + $0x148] sm:$0xff]  ;;  %v1604_v43 = vld [vmem:[%s1844_s13 + $0x180] sm:$0xff]  ;;  %v1612_v33 = vld [vmem:[%s1844_s13 + $0x1f0] sm:$0xff] }
 0x12d   : > { %v930_v52 = vadd.f32 %v1514_v18, %v929_v41  ;;  %v934_v13 = vadd.f32 %v1508_v6, %v1506_v59  ;;  %v544_v20 = vadd.f32 %v543_v14, %v474_v7  ;;  %v478_v40 = vsel %vm414_vm2, %v1598_v8, 0.0  ;;  %v1601_v59 = vld [vmem:[%s1844_s13 + $0x140] sm:$0xff]  ;;  %v1608_v14 = vld [vmem:[%s1844_s13 + $0x1a8] sm:$0xff]  ;;  %v1611_v18 = vld [vmem:[%s1844_s13 + $0x198] sm:$0xff] }
 0x12e   : > { %v481_v16 = vsel %vm417_vm9, %v1599_v22, 0.0  ;;  %vm425_vm14 = vcmp.eq.s32.totalorder %v2189_v21, %v2611_v28  ;;  %540 = vadd.xlane.f32.xlu1 %v539_v29  ;;  %917 = vadd.xlane.f32.xlu0 %v916_v53  ;;  %v921_v47 = vadd.f32 %v2685_v2, %v920_v11  ;;  %v482_v0 = vsel %vm418_vm12, %v1600_v42, 0.0  ;;  %v1606_v41 = vld [vmem:[%s1844_s13 + $0x1e0] sm:$0xff] }
 0x12f   : > { %v553_v49 = vadd.f32 %v552_v36, %v481_v16  ;;  %v562_v17 = vadd.f32 %v488_v5, %v487_v34  ;;  %v549_v38 = vadd.f32 %v548_v30, %v478_v40  ;;  %v926_v26 = vadd.f32 %v2641_v1, %v925_v51  ;;  %v1613_v55 = vld [vmem:[%s1844_s13 + $0x1c0] sm:$0xff] }
 0x130   : > { %v483_v32 = vsel %vm419_vm4, %v1601_v59, 0.0  ;;  %v484_v2 = vsel %vm420_vm5, %v1602_v10, 0.0  ;;  %v931_v48 = vadd.f32 %v1516_v62, %v930_v52  ;;  %v935_v50 = vadd.f32 %v1510_v44, %v934_v13  ;;  %v1614_v62 = vld [vmem:[%s1844_s13 + $0x1c8] sm:$0xff] }
 0x131   : > { %vm426_vm15 = vcmp.eq.s32.totalorder %v2194_v31, %v2611_v28  ;;  %v489_v1 = vsel %vm425_vm14, %v1603_v25, 0.0  ;;  %vm421_vm11 = vcmp.eq.s32.totalorder %v2189_v21, %v2638_v39  ;;  %vm429_vm4 = vcmp.eq.s32.totalorder %v2189_v21, %v2687_v24 }
 0x132   : > { %v491_v9 = vsel %vm427_vm7, %v1604_v43, 0.0  ;;  %v492_v3 = vsel %vm428_vm10, %v1605_v60, 0.0  ;;  %545 = vadd.xlane.f32.xlu1 %v544_v20  ;;  %922 = vadd.xlane.f32.xlu0 %v921_v47  ;;  %v554_v6 = vadd.f32 %v553_v49, %v482_v0  ;;  %v563_v57 = vadd.f32 %v562_v17, %v489_v1  ;;  %v1616_v20 = vld [vmem:[%s1844_s13 + $0x1d0] sm:$0xff]  ;;  %v1617_v47 = vld [vmem:[%s1844_s13 + $0x178] sm:$0xff] }
 0x133   : > { %v557_v19 = vadd.f32 %v484_v2, %v483_v32  ;;  %vm430_vm5 = vcmp.eq.s32.totalorder %v2194_v31, %v2687_v24  ;;  %v567_v61 = vadd.f32 %v492_v3, %v491_v9  ;;  %vm441_vm2 = vcmp.eq.s32.totalorder %v2189_v21, %v2724_v15  ;;  %v1619_v49 = vld [vmem:[%s1844_s13 + $0x150] sm:$0xff]  ;;  %v1621_v32 = vld [vmem:[%s1844_s13 + $0x158] sm:$0xff] }
 0x134   : > { %v503_v58 = vsel %vm439_vm13, %v1606_v41, 0.0  ;;  %v495_v44 = vsel %vm431_vm8, %v1607_v12, 0.0  ;;  %v496_v11 = vsel %vm432_vm0, %v1608_v14, 0.0  ;;  %v493_v35 = vsel %vm429_vm4, %v1609_v27, 0.0  ;;  %v1620_v17 = vld [vmem:[%s1844_s13 + $0x1b0] sm:$0xff]  ;;  %v1622_v2 = vld [vmem:[%s1844_s13 + $0x1b8] sm:$0xff] }
 0x135   : > { %v504_v7 = vsel %vm440_vm1, %v1610_v63, 0.0  ;;  %v568_v30 = vadd.f32 %v567_v61, %v493_v35  ;;  %vm442_vm7 = vcmp.eq.s32.totalorder %v2194_v31, %v2724_v15  ;;  %vm437_vm10 = vcmp.eq.s32.totalorder %v2189_v21, %v2749_v54  ;;  %v1618_v15 = vld [vmem:[%s1844_s13 + $0x1d8] sm:$0xff]  ;;  %v3379_v61 = vld [vmem:[#allocation41_spill] sm:$0xff]  ;;  %v3380_v35 = vld [vmem:[#allocation38_spill] sm:$0xff]  ;;  %s1653_s13 = sshll.u32 %s1719_s12, 4  ;;  %s1654_s13 = int_to_ptr.vmem [resolvable:$false] %s1653_s13 }
 0x136   : > { %v582_v36 = vadd.f32 %v504_v7, %v503_v58  ;;  %550 = vadd.xlane.f32.xlu1 %v549_v38  ;;  %927 = vadd.xlane.f32.xlu0 %v926_v26  ;;  %v494_v51 = vsel %vm430_vm5, %v1611_v18, 0.0  ;;  %v505_v34 = vsel %vm441_vm2, %v1612_v33, 0.0  ;;  %v499_v5 = vsel %vm435_vm3, %v1613_v55, 0.0  ;;  %s1655_s30 = scalar_lea.vmem %s1654_s13, 32  ;;  %p1656_p8 = scmp.lt.s32.totalorder %s3192_s27, %s1654_s13 }
 0x137   : > { %v500_v29 = vsel %vm436_vm6, %v1614_v62, 0.0  ;;  %v569_v53 = vadd.f32 %v568_v30, %v494_v51  ;;  %vm438_vm13 = vcmp.eq.s32.totalorder %v2194_v31, %v2749_v54  ;;  %vm433_vm8 = vcmp.eq.s32.totalorder %v2189_v21, %v2653_v23  ;;  %p1657_p11 = scmp.lt.s32.totalorder %s1655_s30, %s1649_s9 }
 0x138   : > { %v583_v24 = vadd.f32 %v582_v36, %v505_v34  ;;  %v577_v52 = vadd.f32 %v500_v29, %v499_v5  ;;  %v572_v13 = vadd.f32 %v496_v11, %v495_v44  ;;  %v506_v46 = vsel %vm442_vm7, %v1615_v56, 0.0  ;;  %v3381_v34 = vld [vmem:[#allocation39_spill] sm:$0xff]  ;;  %v3382_v29 = vld [vmem:[#allocation44_spill] sm:$0xff] }
 0x139   : > { %v501_v8 = vsel %vm437_vm10, %v1616_v20, 0.0  ;;  %v936_v16 = vadd.f32 %v2773_v37, %v935_v50  ;;  %v490_v42 = vsel %vm426_vm15, %v1617_v47, 0.0  ;;  %v502_v0 = vsel %vm438_vm13, %v1618_v15, 0.0  ;;  %p1658_p12 = por %p1657_p11, %p1656_p8 }
 0x13a   : > { %v584_v40 = vadd.f32 %v583_v24, %v506_v46  ;;  %v578_v22 = vadd.f32 %v577_v52, %v501_v8  ;;  %932 = vadd.xlane.f32.xlu0 %v931_v48  ;;  %555 = vadd.xlane.f32.xlu1 %v554_v6  ;;  %vm422_vm0 = vcmp.eq.s32.totalorder %v2194_v31, %v2638_v39  ;;  %v485_v37 = vsel %vm421_vm11, %v1619_v49, 0.0 }
 0x13b   : > { %v497_v28 = vsel %vm433_vm8, %v1620_v17, 0.0  ;;  %v564_v26 = vadd.f32 %v563_v57, %v490_v42  ;;  %v558_v59 = vadd.f32 %v557_v19, %v485_v37  ;;  %vm434_vm1 = vcmp.eq.s32.totalorder %v2194_v31, %v2653_v23  ;;  %p1659_p0 = pnand %p1658_p12, %p1652_p7 }
 0x13c   : > { %v579_v38 = vadd.f32 %v578_v22, %v502_v0  ;;  %v573_v54 = vadd.f32 %v572_v13, %v497_v28  ;;  %v486_v10 = vsel %vm422_vm0, %v1621_v32, 0.0  ;;  %v498_v48 = vsel %vm434_vm1, %v1622_v2, 0.0 }
 0x13d   : > { %v559_v39 = vadd.f32 %v558_v59, %v486_v10  ;;  %v3384_v42 = vlaneseq  ;;  %v3386_v10 = vld [vmem:[#allocation42_spill] sm:$0xff]  ;;  %vm1185_vm3 = vcmask 7168  }
 0x13e   : > { %937 = vadd.xlane.f32.xlu0 %v936_v16  ;;  %565 = vadd.xlane.f32.xlu1 %v564_v26  ;;  %v574_v50 = vadd.f32 %v573_v54, %v498_v48 }
 0x13f   : > { %v2956_v15 = vshrl.u32 %v3384_v42, 7 }
 0x142   : > { %560 = vadd.xlane.f32.xlu0 %v559_v39  ;;  %575 = vadd.xlane.f32.xlu1 %v574_v50  ;;  %v1105_v50 = vadd.s32 8, %v2956_v15 }
 0x146   : > { %570 = vadd.xlane.f32.xlu0 %v569_v53  ;;  %585 = vadd.xlane.f32.xlu1 %v584_v40  ;;  %v3383_v40 = vld [vmem:[#allocation40_spill] sm:$0xff] }
 0x14a   : > { %580 = vadd.xlane.f32.xlu0 %v579_v38  ;;  %v3385_v38 = vld [vmem:[#allocation46_spill] sm:$0xff] }
 0x18b   : > { %v516_v21 = vpop.xlane.xlu1 %515 }
 0x18c   : > { %v2919_v41 = vsub.f32 %v516_v21, %v3379_v61  ;;  %v2975_v21 = vstv %s1335_s21 }
 0x18f   : > { %v521_v25 = vpop.xlane.xlu1 %520 }
 0x190   : > { %v2926_v63 = vsub.f32 %v521_v25, %v3380_v35 }
 0x192   : > { %v511_v1 = vpop.xlane.xlu0 %510 }
 0x193   : > { %v2933_v55 = vsub.f32 %v511_v1, %v3381_v34 }
 0x196   : > { %v526_v43 = vpop.xlane.xlu1 %525 }
 0x197   : > { %v868_v9 = vpop.xlane.xlu0 %867  ;;  %v2951_v22 = vsub.f32 %v526_v43, %v3383_v40 }
 0x198   : > { %1517 = vlog2.f32 %v868_v9  ;;  %v2980_v9 = vstv %s2935_s20 }
 0x19b   : > { %v531_v31 = vpop.xlane.xlu1 %530 }
 0x19c   : > { %v873_v23 = vpop.xlane.xlu0 %872  ;;  %v2940_v53 = vsub.f32 %v531_v31, %v3382_v29  ;;  %v3007_v29 = vadd.s32 %v2975_v21, %v2956_v15 }
 0x19d   : > { %1519 = vlog2.f32 %v873_v23 }
 0x19e   : > { %vm1137_vm12 = vcmp.lt.s32.totalorder %v3007_v29, 300 }
 0x19f   : > { %v863_v60 = vpop.xlane.xlu1 %862 }
 0x1a0   : > { %v883_v3 = vpop.xlane.xlu0 %882  ;;  %1521 = vlog2.f32 %v863_v60 }
 0x1a1   : > { %1523 = vlog2.f32 %v883_v3 }
 0x1a4   : > { %v878_v6 = vpop.xlane.xlu1 %877  ;;  %v893_v57 = vpop.xlane.xlu0 %892 }
 0x1a5   : > { %v1518_v19 = vpop.eup %1517  ;;  %1525 = vlog2.f32 %v878_v6  ;;  %v1106_v6 = vadd.s32 16, %v2956_v15 }
 0x1a6   : > { %v2921_v58 = vmul.f32 0.6931472, %v1518_v19  ;;  %1527 = vlog2.f32 %v893_v57  ;;  %v2985_v57 = vstv %s1051_s26 }
 0x1a8   : > { %v1004_v12 = vsub.f32 %v2919_v41, %v2921_v58  ;;  %v888_v44 = vpop.xlane.xlu1 %887  ;;  %v988_v40 = vsub.f32 %v2921_v58, %v2919_v41 }
 0x1a9   : > { %v903_v14 = vpop.xlane.xlu0 %902  ;;  %1529 = vlog2.f32 %v888_v44 }
 0x1aa   : > { %v1520_v11 = vpop.eup %1519  ;;  %v1021_v27 = vmul.f32 1.442695, %v1004_v12  ;;  %1531 = vlog2.f32 %v903_v14  ;;  %v3387_v12 = vld [vmem:[#allocation43_spill] sm:$0xff]  ;;  %v1122_v14 = vadd.s32 %v2975_v21, %v1105_v50  ;;  %v1109_v50 = vadd.s32 40, %v2956_v15 }
 0x1ab   : > { %v2928_v7 = vmul.f32 0.6931472, %v1520_v11 }
 0x1ac   : > { %1533 = vpow2.f32 %v1021_v27  ;;  %v898_v30 = vpop.xlane.xlu1 %897  ;;  %vm1138_vm9 = vcmp.lt.s32.totalorder %v1122_v14, 300 }
 0x1ad   : > { %v908_v36 = vpop.xlane.xlu0 %907  ;;  %v1005_v18 = vsub.f32 %v2926_v63, %v2928_v7  ;;  %1535 = vlog2.f32 %v898_v30  ;;  %v1522_v51 = vpop.eup %1521 }
 0x1ae   : > { %v1524_v33 = vpop.eup %1523  ;;  %v2937_v62 = vmul.f32 0.6931472, %v1522_v51 }
 0x1af   : > { %v1023_v5 = vmul.f32 1.442695, %v1005_v18  ;;  %v2942_v24 = vmul.f32 0.6931472, %v1524_v33  ;;  %v3388_v18 = vld [vmem:[#allocation49_spill] sm:$0xff] }
 0x1b0   : > { %v536_v52 = vpop.xlane.xlu1 %535  ;;  %v1003_v56 = vsub.f32 %v2933_v55, %v2937_v62 }
 0x1b1   : > { %v2944_v13 = vpop.xlane.xlu0 %912  ;;  %1537 = vpow2.f32 %v1023_v5  ;;  %v1007_v20 = vsub.f32 %v2940_v53, %v2942_v24  ;;  %v2970_v2 = vsub.f32 %v536_v52, %v3386_v10  ;;  %v3003_v5 = vadd.s32 %v2975_v21, %v1106_v6 }
 0x1b2   : > { %v1526_v46 = vpop.eup %1525  ;;  %1539 = vlog2.f32 %v908_v36  ;;  %v1019_v16 = vmul.f32 1.442695, %v1003_v56  ;;  %v1108_v10 = vadd.s32 32, %v2956_v15 }
 0x1b3   : > { %v1528_v8 = vpop.eup %1527  ;;  %v2953_v47 = vmul.f32 0.6931472, %v1526_v46  ;;  %v1027_v0 = vmul.f32 1.442695, %v1007_v20  ;;  %v1107_v46 = vadd.s32 24, %v2956_v15  ;;  %vm1139_vm6 = vcmp.lt.s32.totalorder %v3003_v5, 300 }
 0x1b4   : > { %1541 = vpow2.f32 %v1019_v16  ;;  %v2961_v28 = vmul.f32 0.6931472, %v1528_v8 }
 0x1b5   : > { %v1006_v17 = vsub.f32 %v2951_v22, %v2953_v47  ;;  %1543 = vpow2.f32 %v1027_v0 }
 0x1b6   : > { %v1530_v59 = vpop.eup %1529 }
 0x1b7   : > { %v541_v49 = vpop.xlane.xlu1 %540  ;;  %v918_v37 = vpop.xlane.xlu0 %917  ;;  %v1025_v54 = vmul.f32 1.442695, %v1006_v17  ;;  %v2967_v32 = vmul.f32 0.6931472, %v1530_v59 }
 0x1b8   : > { %v2964_v26 = vsub.f32 %v541_v49, %v3385_v38  ;;  %v1532_v39 = vpop.eup %1531  ;;  %1545 = vlog2.f32 %v918_v37  ;;  %v3389_v37 = vld [vmem:[#allocation45_spill] sm:$0xff] }
 0x1b9   : > { %v1534_v43 = vpop.eup %1533  ;;  %1547 = vpow2.f32 %v1025_v54  ;;  %v1008_v31 = vsub.f32 %v2970_v2, %v2967_v32  ;;  %v2994_v30 = vmul.f32 0.6931472, %v1532_v39  ;;  %v989_v39 = vsub.f32 %v2928_v7, %v2926_v63  ;;  %v3390_v7 = vld [vmem:[#allocation47_spill] sm:$0xff] }
 0x1ba   : > { %v1009_v48 = vsub.f32 %v2964_v26, %v2961_v28  ;;  %v1536_v60 = vpop.eup %1535  ;;  %v1053_v3 = vsub.f32 1.0, %v1534_v43 }
 0x1bb   : > { %v546_v25 = vpop.xlane.xlu1 %545  ;;  %v2977_v1 = vpop.xlane.xlu0 %922  ;;  %v2987_v19 = vmul.f32 0.6931472, %v1536_v60  ;;  %v1029_v61 = vmul.f32 1.442695, %v1008_v31  ;;  %v987_v60 = vsub.f32 %v2937_v62, %v2933_v55  ;;  %v3041_v55 = vadd.s32 %v2975_v21, %v1108_v10 }
 0x1bc   : > { %v1031_v23 = vmul.f32 1.442695, %v1009_v48  ;;  %v2990_v44 = vsub.f32 %v546_v25, %v3387_v12  ;;  %v1070_v11 = vmul.f32 %v2980_v9, %v1053_v3  ;;  %v1124_v48 = vadd.s32 %v2975_v21, %v1107_v46 }
 0x1bd   : > { %vm1141_vm15 = vcmp.lt.s32.totalorder %v3041_v55, 300  ;;  %v1112_v55 = vadd.s32 64, %v2956_v15 }
 0x1be   : > { %1549 = vpow2.f32 %v1031_v23  ;;  %v1010_v36 = vsub.f32 %v2990_v44, %v2987_v19  ;;  %v1538_v33 = vpop.eup %1537  ;;  %v1087_v34 = vadd.f32 %v2985_v57, %v1070_v11  ;;  %vm1140_vm14 = vcmp.lt.s32.totalorder %v1124_v48, 300 }
 0x1bf   : > { %v551_v27 = vpop.xlane.xlu1 %550  ;;  %v928_v35 = vpop.xlane.xlu0 %927  ;;  %1551 = vpow2.f32 %v1029_v61  ;;  %v1054_v56 = vsub.f32 1.0, %v1538_v33 }
 0x1c0   : > { %v2999_v51 = vsub.f32 %v551_v27, %v3388_v18  ;;  %1553 = vlog2.f32 %v928_v35  ;;  %v1540_v52 = vpop.eup %1539  ;;  %v1033_v20 = vmul.f32 1.442695, %v1010_v36  ;;  %v1154_v59 = vmul.f32 %v1087_v34, %v988_v40 }
 0x1c1   : > { %1555 = vlog2.f32 %v2944_v13  ;;  %v1071_v0 = vmul.f32 %v2980_v9, %v1054_v56  ;;  %v1542_v38 = vpop.eup %1541  ;;  %v3021_v54 = vmul.f32 0.6931472, %v1540_v52  ;;  %v3048_v52 = vadd.s32 %v2975_v21, %v1109_v50 }
 0x1c2   : > { %v1011_v8 = vsub.f32 %v2999_v51, %v2994_v30  ;;  %1557 = vpow2.f32 %v1033_v20  ;;  %v1544_v41 = vpop.eup %1543  ;;  %v1052_v13 = vsub.f32 1.0, %v1542_v38  ;;  %v1170_v12 = vsel %vm1138_vm9, %v1154_v59, 0.0 }
 0x1c3   : > { %v556_v16 = vpop.xlane.xlu1 %555  ;;  %v933_v42 = vpop.xlane.xlu0 %932  ;;  %v1088_v58 = vadd.f32 %v2985_v57, %v1071_v0  ;;  %v1056_v6 = vsub.f32 1.0, %v1544_v41  ;;  %v1187_v20 = vsel %vm1185_vm3, %v1170_v12, 0.0  ;;  %v1110_v40 = vadd.s32 48, %v2956_v15 }
 0x1c4   : > { %v1035_v49 = vmul.f32 1.442695, %v1011_v8  ;;  %v3017_v17 = vsub.f32 %v556_v16, %v3389_v37  ;;  %v1069_v3 = vmul.f32 %v2980_v9, %v1052_v13  ;;  %v990_v8 = vsub.f32 %v2953_v47, %v2951_v22  ;;  %v3391_v47 = vld [vmem:[#allocation48_spill] sm:$0xff] }
 0x1c5   : > { %v1546_v23 = vpop.eup %1545  ;;  %v1155_v27 = vmul.f32 %v1088_v58, %v989_v39  ;;  %v1111_v12 = vadd.s32 56, %v2956_v15  ;;  %vm1142_vm11 = vcmp.lt.s32.totalorder %v3048_v52, 300 }
 0x1c6   : > { %1559 = vpow2.f32 %v1035_v49  ;;  %v1012_v25 = vsub.f32 %v3017_v17, %v3021_v54  ;;  %v1548_v61 = vpop.eup %1547  ;;  %v1086_v35 = vadd.f32 %v2985_v57, %v1069_v3  ;;  %v3043_v62 = vmul.f32 0.6931472, %v1546_v23  ;;  %v3392_v23 = vld [vmem:[#allocation51_spill] sm:$0xff] }
 0x1c7   : > { %v566_v43 = vpop.xlane.xlu1 %565  ;;  %v938_v31 = vpop.xlane.xlu0 %937  ;;  %v1055_v36 = vsub.f32 1.0, %v1548_v61  ;;  %v1171_v0 = vsel %vm1139_vm6, %v1155_v27, 0.0  ;;  %v991_v3 = vsub.f32 %v2942_v24, %v2940_v53  ;;  %v3078_v61 = vadd.s32 %v2975_v21, %v1110_v40 }
 0x1c8   : > { %1561 = vlog2.f32 %v938_v31  ;;  %v1037_v63 = vmul.f32 1.442695, %v1012_v25  ;;  %v3037_v11 = vsub.f32 %v566_v43, %v3390_v7  ;;  %v1153_v33 = vmul.f32 %v1086_v35, %v987_v60 }
 0x1c9   : > { %1563 = vlog2.f32 %v2977_v1  ;;  %v1073_v1 = vmul.f32 %v2980_v9, %v1056_v6  ;;  %v1072_v34 = vmul.f32 %v2980_v9, %v1055_v36  ;;  %v992_v53 = vsub.f32 %v2967_v32, %v2970_v2 }
 0x1ca   : > { %1565 = vlog2.f32 %v933_v42  ;;  %v1014_v16 = vsub.f32 %v3037_v11, %v3043_v62  ;;  %v1169_v49 = vsel %vm1137_vm12, %v1153_v33, 0.0  ;;  %vm1143_vm4 = vcmp.lt.s32.totalorder %v3078_v61, 300 }
 0x1cb   : > { %1567 = vpow2.f32 %v1037_v63  ;;  %v561_v14 = vpop.xlane.xlu0 %560  ;;  %v1550_v18 = vpop.eup %1549  ;;  %v1089_v37 = vadd.f32 %v2985_v57, %v1072_v34  ;;  %v1186_v59 = vsel %vm1185_vm3, %v1169_v49, 0.0  ;;  %v1090_v10 = vadd.f32 %v2985_v57, %v1073_v1 }
 0x1cc   : > { %v576_v56 = vpop.xlane.xlu1 %575  ;;  %v1552_v46 = vpop.eup %1551  ;;  %v1041_v22 = vmul.f32 1.442695, %v1014_v16  ;;  %v1058_v50 = vsub.f32 1.0, %v1550_v18  ;;  %v1188_v43 = vadd.f32 %v1187_v20, %v1186_v59  ;;  %v3072_v60 = vsub.f32 %v561_v14, %v3392_v23 }
 0x1cd   : > { %v1554_v42 = vpop.eup %1553  ;;  %v1057_v38 = vsub.f32 1.0, %v1552_v46  ;;  %v3065_v58 = vsub.f32 %v576_v56, %v3391_v47  ;;  %v1156_v39 = vmul.f32 %v1089_v37, %v990_v8  ;;  %v1189_v14 = vsel %vm1185_vm3, %v1171_v0, 0.0 }
 0x1ce   : > { %v3062_v41 = vmul.f32 0.6931472, %v1554_v42  ;;  %v1556_v13 = vpop.eup %1555  ;;  %1569 = vpow2.f32 %v1041_v22  ;;  %v1157_v18 = vmul.f32 %v1090_v10, %v991_v3  ;;  %v1075_v24 = vmul.f32 %v2980_v9, %v1058_v50  ;;  %v3393_v22 = vld [vmem:[#allocation22_spill] sm:$0xff] }
 0x1cf   : > { %v1074_v5 = vmul.f32 %v2980_v9, %v1057_v38  ;;  %v571_v29 = vpop.xlane.xlu0 %570  ;;  %v1558_v25 = vpop.eup %1557  ;;  %v1172_v63 = vsel %vm1140_vm14, %v1156_v39, 0.0  ;;  %v3082_v7 = vmul.f32 0.6931472, %v1556_v13  ;;  %v1190_v1 = vadd.f32 %v1189_v14, %v1188_v43 }
 0x1d0   : > { %v1016_v31 = vsub.f32 %v3065_v58, %v3062_v41  ;;  %v1059_v27 = vsub.f32 1.0, %v1558_v25  ;;  %v586_v34 = vpop.xlane.xlu1 %585  ;;  %v1191_v46 = vsel %vm1185_vm3, %v1172_v63, 0.0  ;;  %v1128_v32 = vadd.s32 %v2975_v21, %v1111_v12 }
 0x1d1   : > { %v1091_v6 = vadd.f32 %v2985_v57, %v1074_v5  ;;  %v1013_v48 = vsub.f32 %v3072_v60, %v3082_v7  ;;  %v1173_v37 = vsel %vm1141_vm15, %v1157_v18, 0.0  ;;  %v1092_v38 = vadd.f32 %v2985_v57, %v1075_v24 }
 0x1d2   : > { %v1045_v35 = vmul.f32 1.442695, %v1016_v31  ;;  %v1076_v40 = vmul.f32 %v2980_v9, %v1059_v27  ;;  %v3102_v59 = vsub.f32 %v586_v34, %v2242_v4  ;;  %v3105_v47 = vsub.f32 %v571_v29, %v3393_v22 }
 0x1d3   : > { %v1560_v36 = vpop.eup %1559  ;;  %v1158_v20 = vmul.f32 %v1091_v6, %v992_v53  ;;  %v581_v2 = vpop.xlane.xlu0 %580  ;;  %v1039_v0 = vmul.f32 1.442695, %v1013_v48  ;;  %v1192_v13 = vadd.f32 %v1191_v46, %v1190_v1  ;;  %v993_v5 = vsub.f32 %v2961_v28, %v2964_v26 }
 0x1d4   : > { %1571 = vpow2.f32 %v1045_v35  ;;  %v1060_v16 = vsub.f32 1.0, %v1560_v36  ;;  %v3108_v39 = vsub.f32 %v581_v2, %v2356_v45  ;;  %v1093_v25 = vadd.f32 %v2985_v57, %v1076_v40 }
 0x1d5   : > { %v1562_v33 = vpop.eup %1561  ;;  %1573 = vpow2.f32 %v1039_v0  ;;  %v1174_v29 = vsel %vm1142_vm11, %v1158_v20, 0.0  ;;  %v1193_v45 = vsel %vm1185_vm3, %v1173_v37, 0.0  ;;  %v994_v28 = vsub.f32 %v2987_v19, %v2990_v44 }
 0x1d6   : > { %v1564_v56 = vpop.eup %1563  ;;  %v3096_v42 = vmul.f32 0.6931472, %v1562_v33  ;;  %v1077_v43 = vmul.f32 %v2980_v9, %v1060_v16  ;;  %v1194_v3 = vadd.f32 %v1193_v45, %v1192_v13  ;;  %v1159_v6 = vmul.f32 %v1092_v38, %v993_v5 }
 0x1d7   : > { %v1566_v8 = vpop.eup %1565  ;;  %v3112_v50 = vmul.f32 0.6931472, %v1564_v56  ;;  %v1195_v27 = vsel %vm1185_vm3, %v1174_v29, 0.0  ;;  %v1113_v35 = vadd.s32 72, %v2956_v15  ;;  %vm1144_vm5 = vcmp.lt.s32.totalorder %v1128_v32, 300 }
 0x1d8   : > { %v1568_v49 = vpop.eup %1567  ;;  %v1018_v4 = vsub.f32 %v3102_v59, %v3096_v42  ;;  %v3121_v31 = vmul.f32 0.6931472, %v1566_v8  ;;  %v1160_v19 = vmul.f32 %v1093_v25, %v994_v28  ;;  %v1094_v44 = vadd.f32 %v2985_v57, %v1077_v43 }
 0x1d9   : > { %v1061_v10 = vsub.f32 1.0, %v1568_v49  ;;  %v1015_v23 = vsub.f32 %v3105_v47, %v3112_v50  ;;  %v1129_v18 = vadd.s32 %v2975_v21, %v1112_v55  ;;  %v995_v53 = vsub.f32 %v2994_v30, %v2999_v51 }
 0x1da   : > { %v1049_v26 = vmul.f32 1.442695, %v1018_v4  ;;  %v1017_v12 = vsub.f32 %v3108_v39, %v3121_v31  ;;  %v1196_v33 = vadd.f32 %v1195_v27, %v1194_v3  ;;  %v1175_v1 = vsel %vm1143_vm4, %v1159_v6, 0.0 }
 0x1db   : > { %v1078_v52 = vmul.f32 %v2980_v9, %v1061_v10  ;;  %v1570_v63 = vpop.eup %1569  ;;  %v1043_v36 = vmul.f32 1.442695, %v1015_v23  ;;  %v1130_v34 = vadd.s32 %v2975_v21, %v1113_v35  ;;  %v1176_v46 = vsel %vm1144_vm5, %v1160_v19, 0.0 }
 0x1dc   : > { %1575 = vpow2.f32 %v1049_v26  ;;  %v1047_v14 = vmul.f32 1.442695, %v1017_v12  ;;  %v1063_v24 = vsub.f32 1.0, %v1570_v63  ;;  %v1161_v20 = vmul.f32 %v1094_v44, %v995_v53 }
 0x1dd   : > { %1577 = vpow2.f32 %v1043_v36  ;;  %v1095_v48 = vadd.f32 %v2985_v57, %v1078_v52  ;;  %v996_v32 = vsub.f32 %v3021_v54, %v3017_v17  ;;  %v1115_v2 = vadd.s32 88, %v2956_v15 }
 0x1de   : > { %1579 = vpow2.f32 %v1047_v14  ;;  %v1197_v30 = vsel %vm1185_vm3, %v1175_v1, 0.0  ;;  %vm1145_vm2 = vcmp.lt.s32.totalorder %v1129_v18, 300  ;;  %v1080_v51 = vmul.f32 %v2980_v9, %v1063_v24 }
 0x1df   : > { %v1114_v61 = vadd.s32 80, %v2956_v15  ;;  %v1198_v8 = vadd.f32 %v1197_v30, %v1196_v33  ;;  %v1162_v40 = vmul.f32 %v1095_v48, %v996_v32  ;;  %v1199_v0 = vsel %vm1185_vm3, %v1176_v46, 0.0 }
 0x1e0   : > { %vm1146_vm7 = vcmp.lt.s32.totalorder %v1130_v34, 300  ;;  %v1177_v37 = vsel %vm1145_vm2, %v1161_v20, 0.0  ;;  %v1132_v38 = vadd.s32 %v2975_v21, %v1115_v2  ;;  %v1117_v17 = vadd.s32 104, %v2956_v15 }
 0x1e1   : > { %v1572_v56 = vpop.eup %1571  ;;  %v1097_v22 = vadd.f32 %v2985_v57, %v1080_v51  ;;  %v1131_v13 = vadd.s32 %v2975_v21, %v1114_v61  ;;  %v1200_v10 = vadd.f32 %v1199_v0, %v1198_v8  ;;  %v1178_v5 = vsel %vm1146_vm7, %v1162_v40, 0.0 }
 0x1e2   : > { %v1574_v16 = vpop.eup %1573  ;;  %v1065_v49 = vsub.f32 1.0, %v1572_v56  ;;  %v1116_v4 = vadd.s32 96, %v2956_v15  ;;  %v1201_v29 = vsel %vm1185_vm3, %v1177_v37, 0.0  ;;  %v998_v25 = vsub.f32 %v3043_v62, %v3037_v11 }
 0x1e3   : > { %v1062_v54 = vsub.f32 1.0, %v1574_v16  ;;  %v1118_v45 = vadd.s32 112, %v2956_v15  ;;  %vm1148_vm10 = vcmp.lt.s32.totalorder %v1132_v38, 300  ;;  %v1134_v26 = vadd.s32 %v2975_v21, %v1117_v17 }
 0x1e4   : > { %v1082_v43 = vmul.f32 %v2980_v9, %v1065_v49  ;;  %v997_v23 = vsub.f32 %v3082_v7, %v3072_v60  ;;  %v1203_v6 = vsel %vm1185_vm3, %v1178_v5, 0.0  ;;  %v1164_v52 = vmul.f32 %v1097_v22, %v998_v25 }
 0x1e5   : > { %v1079_v55 = vmul.f32 %v2980_v9, %v1062_v54  ;;  %vm1147_vm13 = vcmp.lt.s32.totalorder %v1131_v13, 300  ;;  %v1202_v11 = vadd.f32 %v1201_v29, %v1200_v10  ;;  %v1133_v27 = vadd.s32 %v2975_v21, %v1116_v4 }
 0x1e6   : > { %v1119_v35 = vadd.s32 120, %v2956_v15  ;;  %v1099_v19 = vadd.f32 %v2985_v57, %v1082_v43  ;;  %v1135_v7 = vadd.s32 %v2975_v21, %v1118_v45  ;;  %v1000_v18 = vsub.f32 %v3062_v41, %v3065_v58 }
 0x1e7   : > { %v1096_v3 = vadd.f32 %v2985_v57, %v1079_v55  ;;  %v1204_v14 = vadd.f32 %v1203_v6, %v1202_v11  ;;  %v1180_v33 = vsel %vm1148_vm10, %v1164_v52, 0.0  ;;  %vm1150_vm8 = vcmp.lt.s32.totalorder %v1134_v26, 300 }
 0x1e8   : > { %v1136_v46 = vadd.s32 %v2975_v21, %v1119_v35  ;;  %v1166_v20 = vmul.f32 %v1099_v19, %v1000_v18  ;;  %v1002_v41 = vsub.f32 %v3096_v42, %v3102_v59  ;;  %v999_v58 = vsub.f32 %v3112_v50, %v3105_v47 }
 0x1e9   : > { %v1576_v28 = vpop.eup %1575  ;;  %v1163_v62 = vmul.f32 %v1096_v3, %v997_v23  ;;  %v1207_v2 = vsel %vm1185_vm3, %v1180_v33, 0.0  ;;  %vm1149_vm0 = vcmp.lt.s32.totalorder %v1133_v27, 300  ;;  %v1001_v30 = vsub.f32 %v3121_v31, %v3108_v39 }
 0x1ea   : > { %v1067_v12 = vsub.f32 1.0, %v1576_v28  ;;  %v1578_v63 = vpop.eup %1577  ;;  %vm1151_vm1 = vcmp.lt.s32.totalorder %v1135_v7, 300  ;;  %vm1152_vm9 = vcmp.lt.s32.totalorder %v1136_v46, 300  ;;  %v1182_v42 = vsel %vm1150_vm8, %v1166_v20, 0.0 }
 0x1eb   : > { %v1580_v36 = vpop.eup %1579  ;;  %v1064_v60 = vsub.f32 1.0, %v1578_v63  ;;  %v1179_v53 = vsel %vm1147_vm13, %v1163_v62, 0.0  ;;  %v1211_v0 = vsel %vm1185_vm3, %v1182_v42, 0.0 }
 0x1ec   : > { %v1084_v44 = vmul.f32 %v2980_v9, %v1067_v12  ;;  %v1066_v24 = vsub.f32 1.0, %v1580_v36  ;;  %v1205_v1 = vsel %vm1185_vm3, %v1179_v53, 0.0 }
 0x1ed   : > { %v1081_v48 = vmul.f32 %v2980_v9, %v1064_v60  ;;  %v1206_v34 = vadd.f32 %v1205_v1, %v1204_v14 }
 0x1ee   : > { %v1101_v15 = vadd.f32 %v2985_v57, %v1084_v44  ;;  %v1083_v56 = vmul.f32 %v2980_v9, %v1066_v24 }
 0x1ef   : > { %v1098_v32 = vadd.f32 %v2985_v57, %v1081_v48  ;;  %v1208_v21 = vadd.f32 %v1207_v2, %v1206_v34 }
 0x1f0   : > { %v1100_v51 = vadd.f32 %v2985_v57, %v1083_v56  ;;  %v1168_v9 = vmul.f32 %v1101_v15, %v1002_v41 }
 0x1f1   : > { %v1165_v61 = vmul.f32 %v1098_v32, %v999_v58 }
 0x1f2   : > { %v1167_v8 = vmul.f32 %v1100_v51, %v1001_v30  ;;  %v1184_v40 = vsel %vm1152_vm9, %v1168_v9, 0.0 }
 0x1f3   : > { %v1181_v59 = vsel %vm1149_vm0, %v1165_v61, 0.0  ;;  %v1215_v31 = vsel %vm1185_vm3, %v1184_v40, 0.0 }
 0x1f4   : > { %v1209_v47 = vsel %vm1185_vm3, %v1181_v59, 0.0  ;;  %v1183_v50 = vsel %vm1151_vm1, %v1167_v8, 0.0 }
 0x1f5   : > { %v1210_v16 = vadd.f32 %v1209_v47, %v1208_v21  ;;  %v1213_v39 = vsel %vm1185_vm3, %v1183_v50, 0.0 }
 0x1f7   : > { %v1212_v57 = vadd.f32 %v1211_v0, %v1210_v16 }
 0x1f9   : > { %v1214_v49 = vadd.f32 %v1213_v39, %v1212_v57 }
 0x1fb   : > { %v1216_v37 = vadd.f32 %v1215_v31, %v1214_v49 }
 0x1fd   : > { %1217 = vadd.xlane.f32.xlu0 %v1216_v37 }
 0x286   : > { %v1218_v38 = vpop.xlane.xlu0 %1217 }
 0x287   : > { %v1219_v17 = vrot.slane %v1218_v38, 4 }
 0x289   : > { %v1220_v54 = vadd.f32 %v1219_v17, %v1218_v38 }
 0x28b   : > { %v1221_v22 = vrot.slane %v1220_v54, 2 }
 0x28d   : > { %v1222_v13 = vadd.f32 %v1221_v22, %v1220_v54 }
 0x28f   : > { %v1223_v10 = vrot.slane %v1222_v13, 1 }
 0x291   : > { %v1224_v5 = vadd.f32 %v1223_v10, %v1222_v13 }
 0x293   : > { %1342 = vpush %v1224_v5 }
 0x2c4   : > { %s1343_s28 = spop %1342 }
 0x2c5   : > { %v1226_v55 = vstv %s1343_s28 }
 0x2c6   : > { %1227 = vst [vmem:[%s224_s0] sm:$0x1] %v1226_v55 }
 0x2c7   : > { %1662 = shalt.err (!%p1659_p0)
}
 0x2c8   : > { %s1663_s5 = scalar_lea.hbm %s1239_s6, 16  ;;  %s1667_s10 = scalar_lea.hbm %s3235_s3, 48 }
 0x2c9   : > { %p1664_p1 = scmp.ne.s32.totalorder %s1239_s6, %s1663_s5  ;;  %p1668_p4 = scmp.lt.s32.totalorder %s1239_s6, %s3235_s3 }
 0x2ca   : > { %p1669_p5 = scmp.lt.s32.totalorder %s1667_s10, %s1663_s5 }
 0x2cb   : > { %p1665_p3 = pnand %p1664_p1, %p1787_p9 }
 0x2cc   : > { %p1670_p6 = por %p1669_p5, %p1668_p4 }
 0x2cd   : > { %p1666_p2 = pneg %p1665_p3 }
 0x2cf   : > { %p1671_p10 = pnand %p1670_p6, %p1666_p2 }
 0x2d1   : > { %1674 = shalt.err (!%p1671_p10)
}
 0x2d2   : > { %1345 = dma.vmem_to_hbm [thread:$0]  (%p1787_p9), %s3192_s27, 16, %s1239_s6, %s1229_s7  }
 0x2d3 PF: > { %p1351_p13 = scmp.ge.s32.totalorder %s1713_s17, 2  ;;  %s1253_s20 = sand.u32 1, %s1701_s14  }
 0x2d4   : > { %p3394_p7 = scmp.ne.s32.totalorder %s3286_s25, 0  ;;  %s1254_s21 = scalar_lea.sflag [#allocation5], %s1253_s20 }
 0x2d6   : > { %p1348_p8 = pnand %p1351_p13, %p3394_p7 }
 0x2d8   : > { %p1349_p11 = pneg %p1348_p8 }
 0x2da   : > { %1696 = dma.done.wait (%p1349_p11), %s1254_s21, 16  }
 0x2db   : > { %1698 = vsyncadd (%p1349_p11), %s1254_s21, 4294967280  ;;  %p17_p12 = scmp.ge.s32.totalorder %s1768_s19, 5   ;;  %s3395_s14 = smov %s1705_s15 }
 0x2dc   : > { %s3396_s15 = smov %s1709_s16  ;;  %s3397_s16 = smov %s1780_s22 }
 0x2dd   : > { %s3398_s17 = smov %s1768_s19  ;;  %19 = sbr.rel (!%p17_p12) target bundleno = 7 (0x7), region = 80 }
 0x2e2   :  { %1258 = vsyncpa [#allocation4], 1 }
 0x2e3   :  { %1260 = vsyncpa [#allocation4 + $0x1], 1 }
 0x2e4   :  { %1261 = vsyncpa [#allocation5], 1 }
 0x2e5   :  { %1263 = vsyncpa [#allocation5 + $0x1], 1 }

</bundles_post_ra>
